<compile_context>
chip_gen: v7x
topology: tpu7x:2x2x1
jax: 0.10.0
libtpu: 0.0.40
codegen_flags: <defaults>
</compile_context>

<pallas_src>
import jax
import jax.numpy as jnp
from jax.experimental import pallas as pl
from jax.experimental.pallas import tpu as pltpu


# ---------------------------------------------------------------------------
# Kernel: fc1 (no bias) -> folded BN scale/shift -> ReLU -> fc2 -> ReLU ->
#         N=1 head -> sigmoid, one batch tile per grid step.
# ---------------------------------------------------------------------------
def bn_mlp_kernel(x_ref, w1_ref, scale_ref, shift_ref,
                  w2_ref, b2_ref, w3_ref, b3_ref, o_ref):
    # fc1 without bias: the bias cancels exactly in BatchNorm's mean subtraction.
    h1 = jnp.dot(x_ref[...], w1_ref[...], preferred_element_type=jnp.float32)

    # BatchNorm (train-mode, global batch stats) folded into scale/shift,
    # then ReLU: two VPU ops.
    h1 = jnp.maximum(h1 * scale_ref[...] + shift_ref[...], 0.0)

    # fc2 + ReLU on the MXU.
    h2 = jnp.dot(h1, w2_ref[...], preferred_element_type=jnp.float32) + b2_ref[...]
    h2 = jnp.maximum(h2, 0.0)

    # fc3 has N=1: compute it as (1,64) x (tb,64)^T -> (1,tb) so the result is
    # already a lane-dense row (no (tb,1) column, no masked stores, no XLU
    # transpose).  w3_ref is the PyTorch out.weight row (1, 64).
    logit = jax.lax.dot_general(
        w3_ref[...], h2,
        dimension_numbers=(((1,), (1,)), ((), ())),
        preferred_element_type=jnp.float32) + b3_ref[...]          # (1, tb)

    o_ref[0] = jax.nn.sigmoid(logit)                               # block (1,1,tb)


# ---------------------------------------------------------------------------
# Wrapper
# ---------------------------------------------------------------------------
def _cdiv(a, b):
    return -(-a // b)


def _round_up(n, m):
    return _cdiv(n, m) * m


def batchnorm_mlp(x, params, *, max_tb=4096):
    """x: [B, Din] float32.  params: dict (fc weights stored as [in, out])."""
    B, Din = x.shape
    w1 = params["w1"]
    gamma, beta = params["gamma"], params["beta"]
    w2, b2 = params["w2"], params["b2"]
    w3, b3 = params["w3"], params["b3"]
    F1 = w1.shape[1]
    F2 = w2.shape[1]

    # ---- BatchNorm statistics via the Din x Din Gram identity (plain XLA) ----
    # sum_b h1 = (sum_b x) @ w1 ; sum_b h1^2 = colsum(w1 * ((x^T x) @ w1)).
    # Zero-padded rows contribute exactly 0 (no fc1 bias), and we divide by the
    # true B, so the statistics are exact; here we use the un-padded x anyway.
    sum_x = jnp.sum(x, axis=0, keepdims=True)                      # (1, Din)
    gram = x.T @ x                                                 # (Din, Din)
    sum_h = sum_x @ w1                                             # (1, F1)
    sum_h2 = jnp.sum(w1 * (gram @ w1), axis=0, keepdims=True)      # (1, F1)
    mean = sum_h / B
    var = sum_h2 / B - mean * mean        # biased variance (PyTorch BN1d, train)
    scale = gamma * jax.lax.rsqrt(var + 1e-5)
    shift = beta - mean * scale

    # ---- Batch tiling: pad only to a small unit, tile as large as possible ---
    unit = 512 if B >= 512 else 8
    max_tb = max(int(max_tb), unit)
    Bp = _round_up(B, unit)
    num_tiles = _cdiv(Bp, max_tb)
    tb = _cdiv(Bp // unit, num_tiles) * unit
    Bp = tb * num_tiles
    if Bp != B:
        # Padded rows produce garbage outputs that are sliced off below.
        x = jnp.pad(x, ((0, Bp - B), (0, 0)))

    def const_spec(shape):
        # Loaded once, VMEM-resident across all batch tiles.
        return pl.BlockSpec(shape, lambda i, _s=shape: (0,) * len(_s))

    out = pl.pallas_call(
        bn_mlp_kernel,
        out_shape=jax.ShapeDtypeStruct((num_tiles, 1, tb), jnp.float32),
        grid=(num_tiles,),
        in_specs=[
            pl.BlockSpec((tb, Din), lambda i: (i, 0)),
            const_spec((Din, F1)),
            const_spec((1, F1)),
            const_spec((1, F1)),
            const_spec((F1, F2)),
            const_spec((1, F2)),
            const_spec((1, F2)),
            const_spec((1, 1)),
        ],
        out_specs=pl.BlockSpec((1, 1, tb), lambda i: (i, 0, 0)),
        compiler_params=pltpu.CompilerParams(
            dimension_semantics=("parallel",)),   # megacore-shard tiles on v7x
    )(x, w1, scale, shift, w2, b2, w3, b3)

    # (num_tiles, 1, tb) row-major flatten preserves batch order.
    return out.reshape(Bp, 1)[:B]


# ---------------------------------------------------------------------------
# Reference + test
# ---------------------------------------------------------------------------
def init_params(key, input_dim):
    """Deterministic init matching the PyTorch module's parameter shapes.
    PyTorch: fc1.weight (128, Din), fc2.weight (64, 128), out.weight (1, 64).
    fc1/fc2 weights stored transposed ([in, out]); out.weight kept as (1, 64)."""
    k1, k2, k3, k4, k5, k6, k7 = jax.random.split(key, 7)
    s = 0.05
    return {
        "w1": s * jax.random.normal(k1, (input_dim, 128), jnp.float32),
        "b1": s * jax.random.normal(k4, (1, 128), jnp.float32),  # cancels under BN
        "gamma": 1.0 + s * jax.random.normal(k5, (1, 128), jnp.float32),
        "beta": s * jax.random.normal(k6, (1, 128), jnp.float32),
        "w2": s * jax.random.normal(k2, (128, 64), jnp.float32),
        "b2": s * jax.random.normal(k7, (1, 64), jnp.float32),
        "w3": s * jax.random.normal(k3, (1, 64), jnp.float32),
        "b3": jnp.zeros((1, 1), jnp.float32),
    }


def reference_forward(x, p):
    """Pure-JAX reference of the PyTorch forward (training-mode BatchNorm1d)."""
    h1 = x @ p["w1"] + p["b1"]
    mean = jnp.mean(h1, axis=0, keepdims=True)
    var = jnp.mean((h1 - mean) ** 2, axis=0, keepdims=True)  # biased variance
    h1 = (h1 - mean) / jnp.sqrt(var + 1e-5) * p["gamma"] + p["beta"]
    h1 = jnp.maximum(h1, 0.0)
    h2 = jnp.maximum(h1 @ p["w2"] + p["b2"], 0.0)
    return jax.nn.sigmoid(h2 @ p["w3"].T + p["b3"])


if __name__ == "__main__":
    key = jax.random.PRNGKey(0)
    kx, kp = jax.random.split(key)

    batch = 1000      # not a multiple of the tile -> exercises padding + 2 tiles
    input_dim = 16    # stands in for X_train.shape[1] (StandardScaler'd features)

    x = jax.random.normal(kx, (batch, input_dim), jnp.float32)
    params = init_params(kp, input_dim)

    # max_tb lowered for the test so the grid has >1 step; default is 4096.
    y = jax.block_until_ready(batchnorm_mlp(x, params, max_tb=512))
    y_ref = reference_forward(x, params)

    assert y.shape == (batch, 1)
    assert jnp.allclose(y, y_ref, atol=1e-4, rtol=1e-4), float(
        jnp.max(jnp.abs(y - y_ref)))

    # TODO(synk): BatchNorm1d running_mean/running_var buffer updates (a training
    # side effect, not part of the functional forward output) are not modeled.
    print("KERNEL_OK")
</pallas_src>

<mosaic_0001>
module attributes {stable_mosaic.version = 11 : i64} {
  func.func @bn_mlp_kernel(%arg0: i32, %arg1: memref<512x16xf32, #tpu.memory_space<vmem>>, %arg2: memref<16x128xf32, #tpu.memory_space<vmem>>, %arg3: memref<1x128xf32, #tpu.memory_space<vmem>>, %arg4: memref<1x128xf32, #tpu.memory_space<vmem>>, %arg5: memref<128x64xf32, #tpu.memory_space<vmem>>, %arg6: memref<1x64xf32, #tpu.memory_space<vmem>>, %arg7: memref<1x64xf32, #tpu.memory_space<vmem>>, %arg8: memref<1x1xf32, #tpu.memory_space<vmem>>, %arg9: memref<1x1x512xf32, #tpu.memory_space<vmem>>) attributes {dimension_semantics = [#tpu.dimension_semantics<parallel>], iteration_bounds = array<i64: 2>, scalar_prefetch = 0 : i64, scratch_operands = 0 : i64, tpu.core_type = #tpu.core_type<tc>, window_params = [{transform_indices = @transform_0, window_bounds = array<i64: 512, 16>}, {pipeline_mode = #tpu.pipeline_mode<synchronous>, transform_indices = @transform_1, window_bounds = array<i64: 16, 128>}, {pipeline_mode = #tpu.pipeline_mode<synchronous>, transform_indices = @transform_2, window_bounds = array<i64: 1, 128>}, {pipeline_mode = #tpu.pipeline_mode<synchronous>, transform_indices = @transform_3, window_bounds = array<i64: 1, 128>}, {pipeline_mode = #tpu.pipeline_mode<synchronous>, transform_indices = @transform_4, window_bounds = array<i64: 128, 64>}, {pipeline_mode = #tpu.pipeline_mode<synchronous>, transform_indices = @transform_5, window_bounds = array<i64: 1, 64>}, {pipeline_mode = #tpu.pipeline_mode<synchronous>, transform_indices = @transform_6, window_bounds = array<i64: 1, 64>}, {pipeline_mode = #tpu.pipeline_mode<synchronous>, transform_indices = @transform_7, window_bounds = array<i64: 1, 1>}, {transform_indices = @transform_8, window_bounds = array<i64: 1, 1, 512>}]} {
    %c0 = arith.constant 0 : index
    %c0_0 = arith.constant 0 : index
    %0 = vector.load %arg1[%c0, %c0_0] : memref<512x16xf32, #tpu.memory_space<vmem>>, vector<512x16xf32>
    %c0_1 = arith.constant 0 : index
    %c0_2 = arith.constant 0 : index
    %1 = vector.load %arg2[%c0_1, %c0_2] : memref<16x128xf32, #tpu.memory_space<vmem>>, vector<16x128xf32>
    %cst = arith.constant dense<0.000000e+00> : vector<512x128xf32>
    %2 = tpu.matmul %0, %1, %cst {dimension_numbers = #tpu.dot_dimension_numbers<[1], [0], [0], [1], [0, 0, 1, 1], [], []>} : vector<512x16xf32>, vector<16x128xf32>, vector<512x128xf32> -> vector<512x128xf32>
    %c0_3 = arith.constant 0 : index
    %c0_4 = arith.constant 0 : index
    %3 = vector.load %arg3[%c0_3, %c0_4] : memref<1x128xf32, #tpu.memory_space<vmem>>, vector<1x128xf32>
    %4 = vector.broadcast %3 : vector<1x128xf32> to vector<512x128xf32>
    %5 = arith.mulf %2, %4 : vector<512x128xf32>
    %c0_5 = arith.constant 0 : index
    %c0_6 = arith.constant 0 : index
    %6 = vector.load %arg4[%c0_5, %c0_6] : memref<1x128xf32, #tpu.memory_space<vmem>>, vector<1x128xf32>
    %7 = vector.broadcast %6 : vector<1x128xf32> to vector<512x128xf32>
    %8 = arith.addf %5, %7 : vector<512x128xf32>
    %cst_7 = arith.constant 0.000000e+00 : f32
    %9 = vector.broadcast %cst_7 : f32 to vector<512x128xf32>
    %10 = arith.maximumf %8, %9 : vector<512x128xf32>
    %c0_8 = arith.constant 0 : index
    %c0_9 = arith.constant 0 : index
    %11 = vector.load %arg5[%c0_8, %c0_9] : memref<128x64xf32, #tpu.memory_space<vmem>>, vector<128x64xf32>
    %cst_10 = arith.constant dense<0.000000e+00> : vector<512x64xf32>
    %12 = tpu.matmul %10, %11, %cst_10 {dimension_numbers = #tpu.dot_dimension_numbers<[1], [0], [0], [1], [0, 0, 1, 1], [], []>} : vector<512x128xf32>, vector<128x64xf32>, vector<512x64xf32> -> vector<512x64xf32>
    %c0_11 = arith.constant 0 : index
    %c0_12 = arith.constant 0 : index
    %13 = vector.load %arg6[%c0_11, %c0_12] : memref<1x64xf32, #tpu.memory_space<vmem>>, vector<1x64xf32>
    %14 = vector.broadcast %13 : vector<1x64xf32> to vector<512x64xf32>
    %15 = arith.addf %12, %14 : vector<512x64xf32>
    %cst_13 = arith.constant 0.000000e+00 : f32
    %16 = vector.broadcast %cst_13 : f32 to vector<512x64xf32>
    %17 = arith.maximumf %15, %16 : vector<512x64xf32>
    %c0_14 = arith.constant 0 : index
    %c0_15 = arith.constant 0 : index
    %18 = vector.load %arg7[%c0_14, %c0_15] : memref<1x64xf32, #tpu.memory_space<vmem>>, vector<1x64xf32>
    %cst_16 = arith.constant dense<0.000000e+00> : vector<1x512xf32>
    %19 = tpu.matmul %18, %17, %cst_16 {dimension_numbers = #tpu.dot_dimension_numbers<[1], [1], [0], [0], [0, 0, 1, 0], [], []>} : vector<1x64xf32>, vector<512x64xf32>, vector<1x512xf32> -> vector<1x512xf32>
    %c0_17 = arith.constant 0 : index
    %c0_18 = arith.constant 0 : index
    %20 = vector.load %arg8[%c0_17, %c0_18] : memref<1x1xf32, #tpu.memory_space<vmem>>, vector<1x1xf32>
    %21 = vector.broadcast %20 : vector<1x1xf32> to vector<1x512xf32>
    %22 = arith.addf %19, %21 : vector<1x512xf32>
    %23 = arith.negf %22 : vector<1x512xf32>
    %24 = math.exp %23 : vector<1x512xf32>
    %cst_19 = arith.constant 1.000000e+00 : f32
    %25 = vector.broadcast %cst_19 : f32 to vector<1x512xf32>
    %26 = arith.addf %25, %24 : vector<1x512xf32>
    %27 = arith.divf %25, %26 : vector<1x512xf32>
    %c0_20 = arith.constant 0 : index
    %c0_21 = arith.constant 0 : index
    %c0_22 = arith.constant 0 : index
    %28 = vector.load %arg9[%c0_20, %c0_21, %c0_22] : memref<1x1x512xf32, #tpu.memory_space<vmem>>, vector<1x1x512xf32>
    %29 = vector.shape_cast %28 : vector<1x1x512xf32> to vector<1x512xf32>
    %30 = vector.shape_cast %27 : vector<1x512xf32> to vector<1x1x512xf32>
    tpu.vector_store %arg9[%c0_20, %c0_21, %c0_22], %30 {strides = array<i32>} : memref<1x1x512xf32, #tpu.memory_space<vmem>>, vector<1x1x512xf32>,
    return
  }
  func.func @transform_0(%arg0: i32) -> (i32, i32) {
    %c0_i32 = arith.constant 0 : i32
    %c0_i32_0 = arith.constant 0 : i32
    return %arg0, %c0_i32 : i32, i32
  }
  func.func @transform_1(%arg0: i32) -> (i32, i32) {
    %c0_i32 = arith.constant 0 : i32
    %c0_i32_0 = arith.constant 0 : i32
    %c0_i32_1 = arith.constant 0 : i32
    return %c0_i32, %c0_i32_0 : i32, i32
  }
  func.func @transform_2(%arg0: i32) -> (i32, i32) {
    %c0_i32 = arith.constant 0 : i32
    %c0_i32_0 = arith.constant 0 : i32
    %c0_i32_1 = arith.constant 0 : i32
    return %c0_i32, %c0_i32_0 : i32, i32
  }
  func.func @transform_3(%arg0: i32) -> (i32, i32) {
    %c0_i32 = arith.constant 0 : i32
    %c0_i32_0 = arith.constant 0 : i32
    %c0_i32_1 = arith.constant 0 : i32
    return %c0_i32, %c0_i32_0 : i32, i32
  }
  func.func @transform_4(%arg0: i32) -> (i32, i32) {
    %c0_i32 = arith.constant 0 : i32
    %c0_i32_0 = arith.constant 0 : i32
    %c0_i32_1 = arith.constant 0 : i32
    return %c0_i32, %c0_i32_0 : i32, i32
  }
  func.func @transform_5(%arg0: i32) -> (i32, i32) {
    %c0_i32 = arith.constant 0 : i32
    %c0_i32_0 = arith.constant 0 : i32
    %c0_i32_1 = arith.constant 0 : i32
    return %c0_i32, %c0_i32_0 : i32, i32
  }
  func.func @transform_6(%arg0: i32) -> (i32, i32) {
    %c0_i32 = arith.constant 0 : i32
    %c0_i32_0 = arith.constant 0 : i32
    %c0_i32_1 = arith.constant 0 : i32
    return %c0_i32, %c0_i32_0 : i32, i32
  }
  func.func @transform_7(%arg0: i32) -> (i32, i32) {
    %c0_i32 = arith.constant 0 : i32
    %c0_i32_0 = arith.constant 0 : i32
    %c0_i32_1 = arith.constant 0 : i32
    return %c0_i32, %c0_i32_0 : i32, i32
  }
  func.func @transform_8(%arg0: i32) -> (i32, i32, i32) {
    %c0_i32 = arith.constant 0 : i32
    %c0_i32_0 = arith.constant 0 : i32
    %c0_i32_1 = arith.constant 0 : i32
    return %arg0, %c0_i32, %c0_i32_0 : i32, i32, i32
  }
}

</mosaic_0001>

<bundles_post_ra>
// kernel: tpu_custom_call.1
= control target key start
LH: loop header
LB: loop body
LE: loop exit
PB: predicated region body
PF: predicated region fallthrough
CT: control target
= control target key end

     0   :  { %s3629_s0 = inlined_call_operand.vmem [shape: f32[1024,16], index: 0, kind: input, shape index: {}]   ;;  %s3630_s1 = inlined_call_operand.vmem [shape: f32[16,128], index: 1, kind: input, shape index: {}]   ;;  %s3631_s2 = inlined_call_operand.vmem [shape: f32[1,128], index: 2, kind: input, shape index: {}]   ;;  %s3632_s3 = inlined_call_operand.vmem [shape: f32[1,128], index: 3, kind: input, shape index: {}]   ;;  %s3633_s4 = inlined_call_operand.vmem [shape: f32[128,64], index: 4, kind: input, shape index: {}]   ;;  %s3634_s5 = inlined_call_operand.vmem [shape: f32[1,64], index: 5, kind: input, shape index: {}]   ;;  %s3635_s6 = inlined_call_operand.vmem [shape: f32[1,64], index: 6, kind: input, shape index: {}]   ;;  %s3636_s7 = inlined_call_operand.<no memory space> [shape: f32[1,1], index: 7, kind: input, shape index: {}]   ;;  %s3637_s8 = inlined_call_operand.hbm [shape: f32[2,1,512], index: 8, kind: output, shape index: {}]  }
   0x1   :  { %v13_v0 = vstv %s3636_s7 }
   0x2   :  { %14 = vst [vmem:[#allocation2] sm:$0x1] %v13_v0 }
   0x3   :  { %15 = vsyncpa [#allocation4], 0 }
   0x4   :  { %17 = vsyncpa [#allocation4 + $0x1], 0  ;;  %s3008_s29 = smov 0   ;;  %s3010_s30 = smov 0  }
   0x5   :  { %s3012_s9 = smov 0   ;;  %s3014_s10 = smov 0  }
   0x6 LB: > { %s2110_s7 = sadd.s32 4294967295, %s2955_s10   ;;  %s2111_s11 = sadd.s32 4294967294, %s2955_s10   ;;  %s2955_s10 = sphi %s3014_s10, %s3645_s10   ;;  %s2951_s9 = sphi %s3012_s9, %s3644_s9   ;;  %s2947_s30 = sphi %s3010_s30, %s3643_s30   ;;  %s2943_s29 = sphi %s3008_s29, %s3642_s29  }
   0x7   : > { %s3031_s12 = sadd.s32 1, %s2955_s10   ;;  %s203_s13 = sadd.s32 1, %s2951_s9 }
   0x8   : > { %s200_s14 = ssub.s32 %s2955_s10, %s3031_s12  ;;  %p213_p0 = scmp.ne.s32.totalorder %s2951_s9, %s2947_s30 }
   0x9   : > { %p201_p1 = scmp.eq.s32.totalorder %s200_s14, 0  ;;  %p214_p2 = scmp.eq.s32.totalorder %s2110_s7, 1 }
   0xa   : > { %p219_p3 = scmp.ne.s32.totalorder %s2947_s30, %s2943_s29  ;;  %p220_p4 = scmp.eq.s32.totalorder %s2111_s11, 1 }
   0xb   : > { %s3041_s15 = scalar_select %p201_p1, %s2951_s9, %s203_s13  }
   0xc   : > { %p3043_p5 = por %p214_p2, %p213_p0  ;;  %p3047_p6 = por %p220_p4, %p219_p3 }
   0xd   : > { %p2114_p7 = scmp.ge.s32.totalorder %s2955_s10, 1  ;;  %p268_p8 = scmp.lt.s32.totalorder %s2955_s10, 3 }
   0xf   : > { %p269_p9 = pnand %p2114_p7, %p268_p8 }
  0x10   : > { %v372_v1 = vld [vmem:[%s3630_s1] sm:$0xff] (!%p269_p9)  ;;  %v373_v2 = vld [vmem:[%s3630_s1 + $0x8] sm:$0xff] (!%p269_p9)  ;;  %s3059_s22 = sshll.u32 (!%p269_p9), %s2110_s7, 6  ;;  %vm374_vm0 = vcmask (!%p269_p9), 130048   ;;  %v1160_v6 = vld [vmem:[%s3633_s4 + $0x10] sm:$0xff] (!%p269_p9)  ;;  %vm1641_vm1 = vcmask (!%p269_p9), 523264  }
  0x11   : > { %272 = sbr.rel (%p269_p9) target bundleno = 892 (0x37c), region = 52  ;;  %v2703_v3 = vpack.c.bf16 (!%p269_p9), %v373_v2, %v372_v1  ;;  %p303_p10 = scmp.lt.s32.totalorder (!%p269_p9), %s3059_s22, 127  ;;  %v1158_v4 = vld [vmem:[%s3633_s4] sm:$0xff] (!%p269_p9)  ;;  %v1159_v5 = vld [vmem:[%s3633_s4 + $0x8] sm:$0xff] (!%p269_p9)  ;;  %v1161_v8 = vld [vmem:[%s3633_s4 + $0x18] sm:$0xff] (!%p269_p9) }
  0x12   : > { %v2707_v7 = vpack.c.bf16 (!%p269_p9), %v1159_v5, %v1158_v4  ;;  %v1162_v9 = vld [vmem:[%s3633_s4 + $0x20] sm:$0xff] (!%p269_p9)  ;;  %v1163_v10 = vld [vmem:[%s3633_s4 + $0x28] sm:$0xff] (!%p269_p9)  ;;  %v2711_v14 = vpack.c.bf16 (!%p269_p9), %v1161_v8, %v1160_v6  ;;  %v1164_v26 = vld [vmem:[%s3633_s4 + $0x30] sm:$0xff] (!%p269_p9)  ;;  %s299_s27 = sand.u32 (!%p269_p9), 1, %s2947_s30   ;;  %s3587_s19 = scalar_lea.hbm (!%p269_p9), %s3637_s8, %s3059_s22 }
  0x13   : > { %2704 = vmatprep.subr.bf16.mxu0 (!%p269_p9), %v2703_v3  ;;  %v2715_v16 = vpack.c.bf16 (!%p269_p9), %v1163_v10, %v1162_v9  ;;  %v1165_v27 = vld [vmem:[%s3633_s4 + $0x38] sm:$0xff] (!%p269_p9)  ;;  %v1166_v29 = vld [vmem:[%s3633_s4 + $0x40] sm:$0xff] (!%p269_p9)  ;;  %v1167_v30 = vld [vmem:[%s3633_s4 + $0x48] sm:$0xff] (!%p269_p9)  ;;  %s2115_s28 = sshll.u32 (!%p269_p9), %s299_s27, 2  ;;  %s2038_s20 = scalar_lea.sflag (!%p269_p9), [#allocation4], %s299_s27 }
  0x14   : > { %2706 = vmatpush3.bf16.msra.mxu0 (!%p269_p9), %v2703_v3  ;;  %2708 = vmatprep.subr.bf16.mxu1 (!%p269_p9), %v2707_v7  ;;  %v2719_v28 = vpack.c.bf16 (!%p269_p9), %v1165_v27, %v1164_v26  ;;  %v2723_v32 = vpack.c.bf16 (!%p269_p9), %v1167_v30, %v1166_v29  ;;  %v1168_v33 = vld [vmem:[%s3633_s4 + $0x50] sm:$0xff] (!%p269_p9)  ;;  %v1169_v34 = vld [vmem:[%s3633_s4 + $0x58] sm:$0xff] (!%p269_p9)  ;;  %v1170_v2 = vld [vmem:[%s3633_s4 + $0x60] sm:$0xff] (!%p269_p9)  ;;  %s301_s11 = scalar_lea.vmem (!%p269_p9), [#allocation3], %s2115_s28 }
  0x15   : > { %2710 = vmatpush3.bf16.msra.mxu1 (!%p269_p9), %v2707_v7  ;;  %v2727_v36 = vpack.c.bf16 (!%p269_p9), %v1169_v34, %v1168_v33  ;;  %v1171_v3 = vld [vmem:[%s3633_s4 + $0x68] sm:$0xff] (!%p269_p9)  ;;  %v1172_v7 = vld [vmem:[%s3633_s4 + $0x70] sm:$0xff] (!%p269_p9)  ;;  %v1173_v8 = vld [vmem:[%s3633_s4 + $0x78] sm:$0xff] (!%p269_p9)  ;;  %s2052_s7 = sshll.u32 (!%p269_p9), %s301_s11, 4  ;;  %s3589_s7 = int_to_ptr.vmem [resolvable:$true] %s2052_s7 }
  0x16   : > { %2712 = vmatprep.subr.bf16.mxu1 (!%p269_p9), %v2711_v14  ;;  %v2731_v5 = vpack.c.bf16 (!%p269_p9), %v1171_v3, %v1170_v2  ;;  %v2735_v10 = vpack.c.bf16 (!%p269_p9), %v1173_v8, %v1172_v7  ;;  %v3252_v30 = vld [vmem:[%s3632_s3] ss:$0 sm:$0xff] (!%p269_p9)  ;;  %vm3433_vm2 = vmpackc.low (!%p269_p9), %vm1641_vm1, %vm1641_vm1  ;;  %s2893_s21 = scalar_lea.vmem (!%p269_p9), %s3589_s7, 64 }
  0x17   : > { %p2894_p11 = scmp.ne.s32.totalorder (!%p269_p9), %s3589_s7, %s2893_s21 }
  0x18   : > { %s304_s23 = scalar_select %p303_p10, %s3059_s22, 127 }
  0x19   : > { %2714 = vmatpush3.bf16.msra.mxu1 %v2711_v14  ;;  %p2895_p12 = pnand %p2894_p11, %p3043_p5 }
  0x1a   : > { %s2117_s24 = sshll.u32 %s304_s23, 3  ;;  %2716 = vmatprep.subr.bf16.mxu1 %v2715_v16  ;;  %s2959_s23 = smov [#allocation3]  }
  0x1b   : > { %s3075_s18 = scalar_lea.vmem %s3629_s0, %s2117_s24  ;;  %p2896_p13 = pneg %p2895_p12 }
  0x1c   : > { %v308_v11 = vld [vmem:[%s3075_s18] sm:$0xff]  ;;  %v309_v12 = vld [vmem:[%s3075_s18 + $0x8] sm:$0xff]  ;;  %v310_v13 = vld [vmem:[%s3075_s18 + $0x10] sm:$0xff] }
  0x1d   : > { %2479 = vmatprep.mubr.msk.f32.mxu0 %vm374_vm0, %v308_v11  ;;  %v311_v15 = vld [vmem:[%s3075_s18 + $0x18] sm:$0xff]  ;;  %v312_v17 = vld [vmem:[%s3075_s18 + $0x20] sm:$0xff]  ;;  %v313_v18 = vld [vmem:[%s3075_s18 + $0x28] sm:$0xff]  ;;  %2718 = vmatpush3.bf16.msra.mxu1 %v2715_v16 }
  0x1e   : > { %2480 = vmatmul.mubr.msk.f32.vlgmr.msra.gmra.mrb[0].mxu0 %vm374_vm0, %v309_v12  ;;  %v314_v19 = vld [vmem:[%s3075_s18 + $0x30] sm:$0xff]  ;;  %v315_v20 = vld [vmem:[%s3075_s18 + $0x38] sm:$0xff]  ;;  %v316_v21 = vld [vmem:[%s3075_s18 + $0x40] sm:$0xff]  ;;  %2720 = vmatprep.subr.bf16.mxu1 %v2719_v28 }
  0x1f   : > { %2482 = vmatprep.mubr.msk.f32.mxu0 %vm374_vm0, %v310_v13  ;;  %v317_v22 = vld [vmem:[%s3075_s18 + $0x48] sm:$0xff]  ;;  %v318_v23 = vld [vmem:[%s3075_s18 + $0x50] sm:$0xff]  ;;  %v319_v24 = vld [vmem:[%s3075_s18 + $0x58] sm:$0xff] }
  0x20   : > { %v320_v25 = vld [vmem:[%s3075_s18 + $0x60] sm:$0xff]  ;;  %v321_v31 = vld [vmem:[%s3075_s18 + $0x68] sm:$0xff]  ;;  %v322_v35 = vld [vmem:[%s3075_s18 + $0x70] sm:$0xff] }
  0x21   : > { %2722 = vmatpush3.bf16.msra.mxu1 %v2719_v28  ;;  %v323_v37 = vld [vmem:[%s3075_s18 + $0x78] sm:$0xff]  ;;  %v324_v38 = vld [vmem:[%s3075_s18 + $0x80] sm:$0xff]  ;;  %v325_v39 = vld [vmem:[%s3075_s18 + $0x88] sm:$0xff] }
  0x22   : > { %2483 = vmatmul.mubr.msk.f32.gmra.mrb[2].mxu0 %vm374_vm0, %v311_v15  ;;  %2724 = vmatprep.subr.bf16.mxu1 %v2723_v32  ;;  %v326_v40 = vld [vmem:[%s3075_s18 + $0x90] sm:$0xff]  ;;  %v327_v41 = vld [vmem:[%s3075_s18 + $0x98] sm:$0xff]  ;;  %v328_v42 = vld [vmem:[%s3075_s18 + $0xa0] sm:$0xff] }
  0x23   : > { %2485 = vmatprep.mubr.msk.f32.mxu0 %vm374_vm0, %v312_v17  ;;  %v329_v43 = vld [vmem:[%s3075_s18 + $0xa8] sm:$0xff]  ;;  %v330_v44 = vld [vmem:[%s3075_s18 + $0xb0] sm:$0xff]  ;;  %v331_v45 = vld [vmem:[%s3075_s18 + $0xb8] sm:$0xff] }
  0x24   : > { %v332_v46 = vld [vmem:[%s3075_s18 + $0xc0] sm:$0xff]  ;;  %v333_v47 = vld [vmem:[%s3075_s18 + $0xc8] sm:$0xff]  ;;  %v334_v48 = vld [vmem:[%s3075_s18 + $0xd0] sm:$0xff] }
  0x25   : > { %2726 = vmatpush3.bf16.msra.mxu1 %v2723_v32  ;;  %v335_v49 = vld [vmem:[%s3075_s18 + $0xd8] sm:$0xff]  ;;  %v336_v50 = vld [vmem:[%s3075_s18 + $0xe0] sm:$0xff]  ;;  %v337_v51 = vld [vmem:[%s3075_s18 + $0xe8] sm:$0xff] }
  0x26   : > { %2486 = vmatmul.mubr.msk.f32.gmra.mrb[4].mxu0 %vm374_vm0, %v313_v18  ;;  %2728 = vmatprep.subr.bf16.mxu1 %v2727_v36  ;;  %v338_v52 = vld [vmem:[%s3075_s18 + $0xf0] sm:$0xff]  ;;  %v339_v53 = vld [vmem:[%s3075_s18 + $0xf8] sm:$0xff]  ;;  %v340_v54 = vld [vmem:[%s3075_s18 + $0x100] sm:$0xff] }
  0x27   : > { %2488 = vmatprep.mubr.msk.f32.mxu0 %vm374_vm0, %v314_v19  ;;  %v341_v55 = vld [vmem:[%s3075_s18 + $0x108] sm:$0xff]  ;;  %v342_v56 = vld [vmem:[%s3075_s18 + $0x110] sm:$0xff]  ;;  %v343_v57 = vld [vmem:[%s3075_s18 + $0x118] sm:$0xff] }
  0x28   : > { %v344_v58 = vld [vmem:[%s3075_s18 + $0x120] sm:$0xff]  ;;  %v345_v59 = vld [vmem:[%s3075_s18 + $0x128] sm:$0xff]  ;;  %v346_v60 = vld [vmem:[%s3075_s18 + $0x130] sm:$0xff] }
  0x29   : > { %2730 = vmatpush3.bf16.msra.mxu1 %v2727_v36  ;;  %v347_v61 = vld [vmem:[%s3075_s18 + $0x138] sm:$0xff]  ;;  %v348_v62 = vld [vmem:[%s3075_s18 + $0x140] sm:$0xff]  ;;  %v349_v63 = vld [vmem:[%s3075_s18 + $0x148] sm:$0xff] }
  0x2a   : > { %2489 = vmatmul.mubr.msk.f32.gmra.mrb[6].mxu0 %vm374_vm0, %v315_v20  ;;  %v350_v0 = vld [vmem:[%s3075_s18 + $0x150] sm:$0xff]  ;;  %v351_v1 = vld [vmem:[%s3075_s18 + $0x158] sm:$0xff]  ;;  %v352_v4 = vld [vmem:[%s3075_s18 + $0x160] sm:$0xff]  ;;  %2732 = vmatprep.subr.bf16.mxu1 %v2731_v5 }
  0x2b   : > { %2491 = vmatprep.mubr.msk.f32.mxu0 %vm374_vm0, %v316_v21  ;;  %v353_v6 = vld [vmem:[%s3075_s18 + $0x168] sm:$0xff]  ;;  %v354_v9 = vld [vmem:[%s3075_s18 + $0x170] sm:$0xff]  ;;  %v355_v11 = vld [vmem:[%s3075_s18 + $0x178] sm:$0xff] }
  0x2c   : > { %v356_v12 = vld [vmem:[%s3075_s18 + $0x180] sm:$0xff]  ;;  %v357_v13 = vld [vmem:[%s3075_s18 + $0x188] sm:$0xff]  ;;  %v358_v14 = vld [vmem:[%s3075_s18 + $0x190] sm:$0xff] }
  0x2d   : > { %2734 = vmatpush3.bf16.msra.mxu1 %v2731_v5  ;;  %v359_v15 = vld [vmem:[%s3075_s18 + $0x198] sm:$0xff]  ;;  %v360_v16 = vld [vmem:[%s3075_s18 + $0x1a0] sm:$0xff]  ;;  %v361_v17 = vld [vmem:[%s3075_s18 + $0x1a8] sm:$0xff] }
  0x2e   : > { %2492 = vmatmul.mubr.msk.f32.gmra.mrb[8].mxu0 %vm374_vm0, %v317_v22  ;;  %2736 = vmatprep.subr.bf16.mxu1 %v2735_v10  ;;  %v362_v18 = vld [vmem:[%s3075_s18 + $0x1b0] sm:$0xff]  ;;  %v363_v19 = vld [vmem:[%s3075_s18 + $0x1b8] sm:$0xff]  ;;  %v364_v20 = vld [vmem:[%s3075_s18 + $0x1c0] sm:$0xff] }
  0x2f   : > { %2494 = vmatprep.mubr.msk.f32.mxu0 %vm374_vm0, %v318_v23  ;;  %v365_v21 = vld [vmem:[%s3075_s18 + $0x1c8] sm:$0xff]  ;;  %v366_v22 = vld [vmem:[%s3075_s18 + $0x1d0] sm:$0xff]  ;;  %v367_v23 = vld [vmem:[%s3075_s18 + $0x1d8] sm:$0xff] }
  0x30   : > { %v370_v26 = vld [vmem:[%s3075_s18 + $0x1f0] sm:$0xff]  ;;  %v371_v27 = vld [vmem:[%s3075_s18 + $0x1f8] sm:$0xff]  ;;  %v3247_v28 = vld [vmem:[%s3631_s2] ss:$0 sm:$0xff] }
  0x31   : > { %2738 = vmatpush3.bf16.msra.mxu1 %v2735_v10 }
  0x32   : > { %2495 = vmatmul.mubr.msk.f32.gmra.mrb[10].mxu0 %vm374_vm0, %v319_v24  ;;  %v368_v24 = vld [vmem:[%s3075_s18 + $0x1e0] sm:$0xff] }
  0x33   : > { %2497 = vmatprep.mubr.msk.f32.mxu0 %vm374_vm0, %v320_v25  ;;  %v369_v25 = vld [vmem:[%s3075_s18 + $0x1e8] sm:$0xff]  ;;  %s2897_s18 = sshll.u32 %s2959_s23, 4  ;;  %s2898_s18 = int_to_ptr.vmem [resolvable:$false] %s2897_s18 }
  0x34   : > { %s2899_s25 = scalar_lea.vmem %s2898_s18, 128  ;;  %p2900_p0 = scmp.lt.s32.totalorder %s3589_s7, %s2898_s18 }
  0x35   : > { %p2901_p1 = scmp.lt.s32.totalorder %s2899_s25, %s2893_s21 }
  0x36   : > { %2498 = vmatmul.mubr.msk.f32.gmra.mrb[12].mxu0 %vm374_vm0, %v321_v31 }
  0x37   : > { %2500 = vmatprep.mubr.msk.f32.mxu0 %vm374_vm0, %v322_v35  ;;  %p2902_p2 = por %p2901_p1, %p2900_p0 }
  0x39   : > { %p2903_p3 = pnand %p2902_p2, %p2896_p13 }
  0x3a   : > { %2501 = vmatmul.mubr.msk.f32.gmra.mrb[14].mxu0 %vm374_vm0, %v323_v37 }
  0x3b   : > { %2503 = vmatprep.mubr.msk.f32.mxu0 %vm374_vm0, %v324_v38 }
  0x3e   : > { %2504 = vmatmul.mubr.msk.f32.gmra.mrb[16].mxu0 %vm374_vm0, %v325_v39 }
  0x3f   : > { %2506 = vmatprep.mubr.msk.f32.mxu0 %vm374_vm0, %v326_v40 }
  0x42   : > { %2507 = vmatmul.mubr.msk.f32.gmra.mrb[18].mxu0 %vm374_vm0, %v327_v41 }
  0x43   : > { %2509 = vmatprep.mubr.msk.f32.mxu0 %vm374_vm0, %v328_v42 }
  0x46   : > { %2510 = vmatmul.mubr.msk.f32.gmra.mrb[20].mxu0 %vm374_vm0, %v329_v43 }
  0x47   : > { %2512 = vmatprep.mubr.msk.f32.mxu0 %vm374_vm0, %v330_v44 }
  0x4a   : > { %2513 = vmatmul.mubr.msk.f32.gmra.mrb[22].mxu0 %vm374_vm0, %v331_v45 }
  0x4b   : > { %2515 = vmatprep.mubr.msk.f32.mxu0 %vm374_vm0, %v332_v46 }
  0x4e   : > { %2516 = vmatmul.mubr.msk.f32.gmra.mrb[24].mxu0 %vm374_vm0, %v333_v47 }
  0x4f   : > { %2518 = vmatprep.mubr.msk.f32.mxu0 %vm374_vm0, %v334_v48 }
  0x52   : > { %2519 = vmatmul.mubr.msk.f32.gmra.mrb[26].mxu0 %vm374_vm0, %v335_v49 }
  0x53   : > { %2521 = vmatprep.mubr.msk.f32.mxu0 %vm374_vm0, %v336_v50 }
  0x56   : > { %2522 = vmatmul.mubr.msk.f32.gmra.mrb[28].mxu0 %vm374_vm0, %v337_v51 }
  0x57   : > { %2524 = vmatprep.mubr.msk.f32.mxu0 %vm374_vm0, %v338_v52 }
  0x5a   : > { %2525 = vmatmul.mubr.msk.f32.gmra.mrb[30].mxu0 %vm374_vm0, %v339_v53 }
  0x5b   : > { %2527 = vmatprep.mubr.msk.f32.mxu0 %vm374_vm0, %v340_v54 }
  0x5e   : > { %2528 = vmatmul.mubr.msk.f32.gmra.mrb[32].mxu0 %vm374_vm0, %v341_v55 }
  0x5f   : > { %2530 = vmatprep.mubr.msk.f32.mxu0 %vm374_vm0, %v342_v56 }
  0x62   : > { %2531 = vmatmul.mubr.msk.f32.gmra.mrb[34].mxu0 %vm374_vm0, %v343_v57 }
  0x63   : > { %2533 = vmatprep.mubr.msk.f32.mxu0 %vm374_vm0, %v344_v58 }
  0x66   : > { %2534 = vmatmul.mubr.msk.f32.gmra.mrb[36].mxu0 %vm374_vm0, %v345_v59 }
  0x67   : > { %2536 = vmatprep.mubr.msk.f32.mxu0 %vm374_vm0, %v346_v60 }
  0x6a   : > { %2537 = vmatmul.mubr.msk.f32.gmra.mrb[38].mxu0 %vm374_vm0, %v347_v61 }
  0x6b   : > { %2539 = vmatprep.mubr.msk.f32.mxu0 %vm374_vm0, %v348_v62 }
  0x6e   : > { %2540 = vmatmul.mubr.msk.f32.gmra.mrb[40].mxu0 %vm374_vm0, %v349_v63 }
  0x6f   : > { %2542 = vmatprep.mubr.msk.f32.mxu0 %vm374_vm0, %v350_v0 }
  0x72   : > { %2543 = vmatmul.mubr.msk.f32.gmra.mrb[42].mxu0 %vm374_vm0, %v351_v1 }
  0x73   : > { %2545 = vmatprep.mubr.msk.f32.mxu0 %vm374_vm0, %v352_v4 }
  0x76   : > { %2546 = vmatmul.mubr.msk.f32.gmra.mrb[44].mxu0 %vm374_vm0, %v353_v6 }
  0x77   : > { %2548 = vmatprep.mubr.msk.f32.mxu0 %vm374_vm0, %v354_v9 }
  0x7a   : > { %2549 = vmatmul.mubr.msk.f32.gmra.mrb[46].mxu0 %vm374_vm0, %v355_v11 }
  0x7b   : > { %2551 = vmatprep.mubr.msk.f32.mxu0 %vm374_vm0, %v356_v12 }
  0x7e   : > { %2552 = vmatmul.mubr.msk.f32.gmra.mrb[48].mxu0 %vm374_vm0, %v357_v13 }
  0x7f   : > { %2554 = vmatprep.mubr.msk.f32.mxu0 %vm374_vm0, %v358_v14 }
  0x82   : > { %2555 = vmatmul.mubr.msk.f32.gmra.mrb[50].mxu0 %vm374_vm0, %v359_v15 }
  0x83   : > { %2557 = vmatprep.mubr.msk.f32.mxu0 %vm374_vm0, %v360_v16 }
  0x86   : > { %2558 = vmatmul.mubr.msk.f32.gmra.mrb[52].mxu0 %vm374_vm0, %v361_v17 }
  0x87   : > { %2560 = vmatprep.mubr.msk.f32.mxu0 %vm374_vm0, %v362_v18 }
  0x8a   : > { %2561 = vmatmul.mubr.msk.f32.gmra.mrb[54].mxu0 %vm374_vm0, %v363_v19 }
  0x8b   : > { %2563 = vmatprep.mubr.msk.f32.mxu0 %vm374_vm0, %v364_v20 }
  0x8e   : > { %2564 = vmatmul.mubr.msk.f32.gmra.mrb[56].mxu0 %vm374_vm0, %v365_v21 }
  0x8f   : > { %2566 = vmatprep.mubr.msk.f32.mxu0 %vm374_vm0, %v366_v22 }
  0x92   : > { %2567 = vmatmul.mubr.msk.f32.gmra.mrb[58].mxu0 %vm374_vm0, %v367_v23 }
  0x93   : > { %2569 = vmatprep.mubr.msk.f32.mxu0 %vm374_vm0, %v368_v24 }
  0x96   : > { %2570 = vmatmul.mubr.msk.f32.gmra.mrb[60].mxu0 %vm374_vm0, %v369_v25 }
  0x97   : > { %2572 = vmatprep.mubr.msk.f32.mxu0 %vm374_vm0, %v370_v26 }
  0x9a   : > { %2573 = vmatmul.mubr.msk.f32.gmra.mrb[62].mxu0 %vm374_vm0, %v371_v27 }
  0xf1   : > { %v2481_v29 = vpop.f32.mrb[0].mxu0 }
  0xf2   : > { %v960_v31 = vmul.f32 %v2481_v29, %v3247_v28  ;;  %v633_v32 = vpop.f32.mrb[1].mxu0 }
  0xf3   : > { %v959_v33 = vmul.f32 %v3247_v28, %v633_v32 }
  0xf4   : > { %v1031_v34 = vadd.f32 %v3252_v30, %v960_v31 }
  0xf5   : > { %v2484_v35 = vpop.f32.mrb[2].mxu0  ;;  %v1030_v36 = vadd.f32 %v3252_v30, %v959_v33 }
  0xf6   : > { %v962_v37 = vmul.f32 %v2484_v35, %v3247_v28  ;;  %v643_v38 = vpop.f32.mrb[3].mxu0  ;;  %v1095_v41 = vmax.f32 %v1031_v34, 0.0 }
  0xf7   : > { %v961_v39 = vmul.f32 %v3247_v28, %v643_v38  ;;  %v1094_v40 = vmax.f32 %v1030_v36, 0.0 }
  0xf8   : > { %v1033_v42 = vadd.f32 %v3252_v30, %v962_v37 }
  0xf9   : > { %v1032_v43 = vadd.f32 %v3252_v30, %v961_v39  ;;  %v2487_v44 = vpop.f32.mrb[4].mxu0  ;;  %2607 = vmatprep.mubr.f32.mxu1 %v1094_v40 }
  0xfa   : > { %v964_v45 = vmul.f32 %v2487_v44, %v3247_v28  ;;  %v653_v46 = vpop.f32.mrb[5].mxu0  ;;  %2608 = vmatmul.mubr.f32.vlgmr.msra.gmra.mrb[0].mxu1 %v1095_v41  ;;  %v1097_v49 = vmax.f32 %v1033_v42, 0.0 }
  0xfb   : > { %v1096_v47 = vmax.f32 %v1032_v43, 0.0  ;;  %v963_v48 = vmul.f32 %v3247_v28, %v653_v46 }
  0xfc   : > { %v1035_v50 = vadd.f32 %v3252_v30, %v964_v45 }
  0xfd   : > { %v1034_v51 = vadd.f32 %v3252_v30, %v963_v48  ;;  %v2490_v52 = vpop.f32.mrb[6].mxu0  ;;  %2610 = vmatprep.mubr.f32.mxu1 %v1096_v47 }
  0xfe   : > { %v966_v53 = vmul.f32 %v2490_v52, %v3247_v28  ;;  %v663_v54 = vpop.f32.mrb[7].mxu0  ;;  %2611 = vmatmul.mubr.f32.gmra.mrb[2].mxu1 %v1097_v49  ;;  %v1099_v57 = vmax.f32 %v1035_v50, 0.0 }
  0xff   : > { %v1098_v55 = vmax.f32 %v1034_v51, 0.0  ;;  %v965_v56 = vmul.f32 %v3247_v28, %v663_v54 }
 0x100   : > { %v1037_v58 = vadd.f32 %v3252_v30, %v966_v53 }
 0x101   : > { %v1036_v59 = vadd.f32 %v3252_v30, %v965_v56  ;;  %v2493_v60 = vpop.f32.mrb[8].mxu0  ;;  %2613 = vmatprep.mubr.f32.mxu1 %v1098_v55 }
 0x102   : > { %v968_v61 = vmul.f32 %v2493_v60, %v3247_v28  ;;  %v673_v62 = vpop.f32.mrb[9].mxu0  ;;  %2614 = vmatmul.mubr.f32.gmra.mrb[4].mxu1 %v1099_v57  ;;  %v1101_v1 = vmax.f32 %v1037_v58, 0.0 }
 0x103   : > { %v1100_v63 = vmax.f32 %v1036_v59, 0.0  ;;  %v967_v0 = vmul.f32 %v3247_v28, %v673_v62 }
 0x104   : > { %v1039_v2 = vadd.f32 %v3252_v30, %v968_v61 }
 0x105   : > { %v1038_v3 = vadd.f32 %v3252_v30, %v967_v0  ;;  %v2496_v4 = vpop.f32.mrb[10].mxu0  ;;  %2616 = vmatprep.mubr.f32.mxu1 %v1100_v63 }
 0x106   : > { %v970_v5 = vmul.f32 %v2496_v4, %v3247_v28  ;;  %v683_v6 = vpop.f32.mrb[11].mxu0  ;;  %2617 = vmatmul.mubr.f32.gmra.mrb[6].mxu1 %v1101_v1  ;;  %v1103_v9 = vmax.f32 %v1039_v2, 0.0 }
 0x107   : > { %v1102_v7 = vmax.f32 %v1038_v3, 0.0  ;;  %v969_v8 = vmul.f32 %v3247_v28, %v683_v6 }
 0x108   : > { %v1041_v10 = vadd.f32 %v3252_v30, %v970_v5 }
 0x109   : > { %v1040_v11 = vadd.f32 %v3252_v30, %v969_v8  ;;  %v2499_v12 = vpop.f32.mrb[12].mxu0  ;;  %2619 = vmatprep.mubr.f32.mxu1 %v1102_v7 }
 0x10a   : > { %v972_v13 = vmul.f32 %v2499_v12, %v3247_v28  ;;  %v693_v14 = vpop.f32.mrb[13].mxu0  ;;  %2620 = vmatmul.mubr.f32.gmra.mrb[8].mxu1 %v1103_v9  ;;  %v1105_v17 = vmax.f32 %v1041_v10, 0.0 }
 0x10b   : > { %v1104_v15 = vmax.f32 %v1040_v11, 0.0  ;;  %v971_v16 = vmul.f32 %v3247_v28, %v693_v14 }
 0x10c   : > { %v1043_v18 = vadd.f32 %v3252_v30, %v972_v13 }
 0x10d   : > { %v1042_v19 = vadd.f32 %v3252_v30, %v971_v16  ;;  %v2502_v20 = vpop.f32.mrb[14].mxu0  ;;  %2622 = vmatprep.mubr.f32.mxu1 %v1104_v15 }
 0x10e   : > { %v974_v21 = vmul.f32 %v2502_v20, %v3247_v28  ;;  %v703_v22 = vpop.f32.mrb[15].mxu0  ;;  %2623 = vmatmul.mubr.f32.gmra.mrb[10].mxu1 %v1105_v17  ;;  %v1107_v25 = vmax.f32 %v1043_v18, 0.0 }
 0x10f   : > { %v1106_v23 = vmax.f32 %v1042_v19, 0.0  ;;  %v973_v24 = vmul.f32 %v3247_v28, %v703_v22 }
 0x110   : > { %v1045_v26 = vadd.f32 %v3252_v30, %v974_v21 }
 0x111   : > { %v1044_v27 = vadd.f32 %v3252_v30, %v973_v24  ;;  %v2505_v29 = vpop.f32.mrb[16].mxu0  ;;  %2625 = vmatprep.mubr.f32.mxu1 %v1106_v23 }
 0x112   : > { %v976_v31 = vmul.f32 %v2505_v29, %v3247_v28  ;;  %v713_v32 = vpop.f32.mrb[17].mxu0  ;;  %2626 = vmatmul.mubr.f32.gmra.mrb[12].mxu1 %v1107_v25  ;;  %v1109_v35 = vmax.f32 %v1045_v26, 0.0 }
 0x113   : > { %v1108_v33 = vmax.f32 %v1044_v27, 0.0  ;;  %v975_v34 = vmul.f32 %v3247_v28, %v713_v32 }
 0x114   : > { %v1047_v36 = vadd.f32 %v3252_v30, %v976_v31 }
 0x115   : > { %v1046_v37 = vadd.f32 %v3252_v30, %v975_v34  ;;  %v2508_v38 = vpop.f32.mrb[18].mxu0  ;;  %2628 = vmatprep.mubr.f32.mxu1 %v1108_v33 }
 0x116   : > { %v978_v39 = vmul.f32 %v2508_v38, %v3247_v28  ;;  %v723_v40 = vpop.f32.mrb[19].mxu0  ;;  %2629 = vmatmul.mubr.f32.gmra.mrb[14].mxu1 %v1109_v35  ;;  %v1111_v43 = vmax.f32 %v1047_v36, 0.0 }
 0x117   : > { %v1110_v41 = vmax.f32 %v1046_v37, 0.0  ;;  %v977_v42 = vmul.f32 %v3247_v28, %v723_v40 }
 0x118   : > { %v1049_v44 = vadd.f32 %v3252_v30, %v978_v39 }
 0x119   : > { %v1048_v45 = vadd.f32 %v3252_v30, %v977_v42  ;;  %v2511_v46 = vpop.f32.mrb[20].mxu0  ;;  %2631 = vmatprep.mubr.f32.mxu1 %v1110_v41 }
 0x11a   : > { %v980_v47 = vmul.f32 %v2511_v46, %v3247_v28  ;;  %v733_v48 = vpop.f32.mrb[21].mxu0  ;;  %2632 = vmatmul.mubr.f32.gmra.mrb[16].mxu1 %v1111_v43  ;;  %v1113_v51 = vmax.f32 %v1049_v44, 0.0 }
 0x11b   : > { %v1112_v49 = vmax.f32 %v1048_v45, 0.0  ;;  %v979_v50 = vmul.f32 %v3247_v28, %v733_v48 }
 0x11c   : > { %v1051_v52 = vadd.f32 %v3252_v30, %v980_v47 }
 0x11d   : > { %v1050_v53 = vadd.f32 %v3252_v30, %v979_v50  ;;  %v2514_v54 = vpop.f32.mrb[22].mxu0  ;;  %2634 = vmatprep.mubr.f32.mxu1 %v1112_v49 }
 0x11e   : > { %v982_v55 = vmul.f32 %v2514_v54, %v3247_v28  ;;  %v743_v56 = vpop.f32.mrb[23].mxu0  ;;  %2635 = vmatmul.mubr.f32.gmra.mrb[18].mxu1 %v1113_v51  ;;  %v1115_v59 = vmax.f32 %v1051_v52, 0.0 }
 0x11f   : > { %v1114_v57 = vmax.f32 %v1050_v53, 0.0  ;;  %v981_v58 = vmul.f32 %v3247_v28, %v743_v56 }
 0x120   : > { %v1053_v60 = vadd.f32 %v3252_v30, %v982_v55 }
 0x121   : > { %v1052_v61 = vadd.f32 %v3252_v30, %v981_v58  ;;  %v2517_v62 = vpop.f32.mrb[24].mxu0  ;;  %2637 = vmatprep.mubr.f32.mxu1 %v1114_v57 }
 0x122   : > { %v984_v63 = vmul.f32 %v2517_v62, %v3247_v28  ;;  %v753_v0 = vpop.f32.mrb[25].mxu0  ;;  %2638 = vmatmul.mubr.f32.gmra.mrb[20].mxu1 %v1115_v59  ;;  %v1117_v3 = vmax.f32 %v1053_v60, 0.0 }
 0x123   : > { %v1116_v1 = vmax.f32 %v1052_v61, 0.0  ;;  %v983_v2 = vmul.f32 %v3247_v28, %v753_v0 }
 0x124   : > { %v1055_v4 = vadd.f32 %v3252_v30, %v984_v63 }
 0x125   : > { %v1054_v5 = vadd.f32 %v3252_v30, %v983_v2  ;;  %v2520_v6 = vpop.f32.mrb[26].mxu0  ;;  %2640 = vmatprep.mubr.f32.mxu1 %v1116_v1 }
 0x126   : > { %v986_v7 = vmul.f32 %v2520_v6, %v3247_v28  ;;  %v763_v8 = vpop.f32.mrb[27].mxu0  ;;  %2641 = vmatmul.mubr.f32.gmra.mrb[22].mxu1 %v1117_v3  ;;  %v1119_v11 = vmax.f32 %v1055_v4, 0.0 }
 0x127   : > { %v1118_v9 = vmax.f32 %v1054_v5, 0.0  ;;  %v985_v10 = vmul.f32 %v3247_v28, %v763_v8 }
 0x128   : > { %v1057_v12 = vadd.f32 %v3252_v30, %v986_v7 }
 0x129   : > { %v1056_v13 = vadd.f32 %v3252_v30, %v985_v10  ;;  %v2523_v14 = vpop.f32.mrb[28].mxu0  ;;  %2643 = vmatprep.mubr.f32.mxu1 %v1118_v9 }
 0x12a   : > { %v988_v15 = vmul.f32 %v2523_v14, %v3247_v28  ;;  %v773_v16 = vpop.f32.mrb[29].mxu0  ;;  %2644 = vmatmul.mubr.f32.gmra.mrb[24].mxu1 %v1119_v11  ;;  %v1121_v19 = vmax.f32 %v1057_v12, 0.0 }
 0x12b   : > { %v1120_v17 = vmax.f32 %v1056_v13, 0.0  ;;  %v987_v18 = vmul.f32 %v3247_v28, %v773_v16 }
 0x12c   : > { %v1059_v20 = vadd.f32 %v3252_v30, %v988_v15 }
 0x12d   : > { %v1058_v21 = vadd.f32 %v3252_v30, %v987_v18  ;;  %v2526_v22 = vpop.f32.mrb[30].mxu0  ;;  %2646 = vmatprep.mubr.f32.mxu1 %v1120_v17 }
 0x12e   : > { %v990_v23 = vmul.f32 %v2526_v22, %v3247_v28  ;;  %v783_v24 = vpop.f32.mrb[31].mxu0  ;;  %2647 = vmatmul.mubr.f32.gmra.mrb[26].mxu1 %v1121_v19  ;;  %v1123_v27 = vmax.f32 %v1059_v20, 0.0 }
 0x12f   : > { %v1122_v25 = vmax.f32 %v1058_v21, 0.0  ;;  %v989_v26 = vmul.f32 %v3247_v28, %v783_v24 }
 0x130   : > { %v1061_v29 = vadd.f32 %v3252_v30, %v990_v23 }
 0x131   : > { %v1060_v31 = vadd.f32 %v3252_v30, %v989_v26  ;;  %v2529_v32 = vpop.f32.mrb[32].mxu0  ;;  %2649 = vmatprep.mubr.f32.mxu1 %v1122_v25 }
 0x132   : > { %v992_v33 = vmul.f32 %v2529_v32, %v3247_v28  ;;  %v793_v34 = vpop.f32.mrb[33].mxu0  ;;  %2650 = vmatmul.mubr.f32.gmra.mrb[28].mxu1 %v1123_v27  ;;  %v1125_v37 = vmax.f32 %v1061_v29, 0.0 }
 0x133   : > { %v1124_v35 = vmax.f32 %v1060_v31, 0.0  ;;  %v991_v36 = vmul.f32 %v3247_v28, %v793_v34 }
 0x134   : > { %v1063_v38 = vadd.f32 %v3252_v30, %v992_v33 }
 0x135   : > { %v1062_v39 = vadd.f32 %v3252_v30, %v991_v36  ;;  %v2532_v40 = vpop.f32.mrb[34].mxu0  ;;  %2652 = vmatprep.mubr.f32.mxu1 %v1124_v35 }
 0x136   : > { %v994_v41 = vmul.f32 %v2532_v40, %v3247_v28  ;;  %v803_v42 = vpop.f32.mrb[35].mxu0  ;;  %2653 = vmatmul.mubr.f32.gmra.mrb[30].mxu1 %v1125_v37  ;;  %v1127_v45 = vmax.f32 %v1063_v38, 0.0 }
 0x137   : > { %v1126_v43 = vmax.f32 %v1062_v39, 0.0  ;;  %v993_v44 = vmul.f32 %v3247_v28, %v803_v42 }
 0x138   : > { %v1065_v46 = vadd.f32 %v3252_v30, %v994_v41 }
 0x139   : > { %v1064_v47 = vadd.f32 %v3252_v30, %v993_v44  ;;  %v2535_v48 = vpop.f32.mrb[36].mxu0  ;;  %2655 = vmatprep.mubr.f32.mxu1 %v1126_v43 }
 0x13a   : > { %v996_v49 = vmul.f32 %v2535_v48, %v3247_v28  ;;  %v813_v50 = vpop.f32.mrb[37].mxu0  ;;  %2656 = vmatmul.mubr.f32.gmra.mrb[32].mxu1 %v1127_v45  ;;  %v1129_v53 = vmax.f32 %v1065_v46, 0.0 }
 0x13b   : > { %v1128_v51 = vmax.f32 %v1064_v47, 0.0  ;;  %v995_v52 = vmul.f32 %v3247_v28, %v813_v50 }
 0x13c   : > { %v1067_v54 = vadd.f32 %v3252_v30, %v996_v49 }
 0x13d   : > { %v1066_v55 = vadd.f32 %v3252_v30, %v995_v52  ;;  %v2538_v56 = vpop.f32.mrb[38].mxu0  ;;  %2658 = vmatprep.mubr.f32.mxu1 %v1128_v51 }
 0x13e   : > { %v998_v57 = vmul.f32 %v2538_v56, %v3247_v28  ;;  %v823_v58 = vpop.f32.mrb[39].mxu0  ;;  %2659 = vmatmul.mubr.f32.gmra.mrb[34].mxu1 %v1129_v53  ;;  %v1131_v61 = vmax.f32 %v1067_v54, 0.0 }
 0x13f   : > { %v1130_v59 = vmax.f32 %v1066_v55, 0.0  ;;  %v997_v60 = vmul.f32 %v3247_v28, %v823_v58 }
 0x140   : > { %v1069_v62 = vadd.f32 %v3252_v30, %v998_v57 }
 0x141   : > { %v1068_v63 = vadd.f32 %v3252_v30, %v997_v60  ;;  %v2541_v0 = vpop.f32.mrb[40].mxu0  ;;  %2661 = vmatprep.mubr.f32.mxu1 %v1130_v59 }
 0x142   : > { %v1000_v1 = vmul.f32 %v2541_v0, %v3247_v28  ;;  %v833_v2 = vpop.f32.mrb[41].mxu0  ;;  %2662 = vmatmul.mubr.f32.gmra.mrb[36].mxu1 %v1131_v61  ;;  %v1133_v5 = vmax.f32 %v1069_v62, 0.0 }
 0x143   : > { %v1132_v3 = vmax.f32 %v1068_v63, 0.0  ;;  %v999_v4 = vmul.f32 %v3247_v28, %v833_v2 }
 0x144   : > { %v1071_v6 = vadd.f32 %v3252_v30, %v1000_v1 }
 0x145   : > { %v1070_v7 = vadd.f32 %v3252_v30, %v999_v4  ;;  %v2544_v8 = vpop.f32.mrb[42].mxu0  ;;  %2664 = vmatprep.mubr.f32.mxu1 %v1132_v3 }
 0x146   : > { %v1002_v9 = vmul.f32 %v2544_v8, %v3247_v28  ;;  %v843_v10 = vpop.f32.mrb[43].mxu0  ;;  %2665 = vmatmul.mubr.f32.gmra.mrb[38].mxu1 %v1133_v5  ;;  %v1135_v13 = vmax.f32 %v1071_v6, 0.0 }
 0x147   : > { %v1134_v11 = vmax.f32 %v1070_v7, 0.0  ;;  %v1001_v12 = vmul.f32 %v3247_v28, %v843_v10 }
 0x148   : > { %v1073_v14 = vadd.f32 %v3252_v30, %v1002_v9 }
 0x149   : > { %v1072_v15 = vadd.f32 %v3252_v30, %v1001_v12  ;;  %v2547_v16 = vpop.f32.mrb[44].mxu0  ;;  %2667 = vmatprep.mubr.f32.mxu1 %v1134_v11 }
 0x14a   : > { %v1004_v17 = vmul.f32 %v2547_v16, %v3247_v28  ;;  %v853_v18 = vpop.f32.mrb[45].mxu0  ;;  %2668 = vmatmul.mubr.f32.gmra.mrb[40].mxu1 %v1135_v13  ;;  %v1137_v21 = vmax.f32 %v1073_v14, 0.0 }
 0x14b   : > { %v1136_v19 = vmax.f32 %v1072_v15, 0.0  ;;  %v1003_v20 = vmul.f32 %v3247_v28, %v853_v18 }
 0x14c   : > { %v1075_v22 = vadd.f32 %v3252_v30, %v1004_v17 }
 0x14d   : > { %v1074_v23 = vadd.f32 %v3252_v30, %v1003_v20  ;;  %v2550_v24 = vpop.f32.mrb[46].mxu0  ;;  %2670 = vmatprep.mubr.f32.mxu1 %v1136_v19 }
 0x14e   : > { %v1006_v25 = vmul.f32 %v2550_v24, %v3247_v28  ;;  %v863_v26 = vpop.f32.mrb[47].mxu0  ;;  %2671 = vmatmul.mubr.f32.gmra.mrb[42].mxu1 %v1137_v21  ;;  %v1139_v31 = vmax.f32 %v1075_v22, 0.0 }
 0x14f   : > { %v1138_v27 = vmax.f32 %v1074_v23, 0.0  ;;  %v1005_v29 = vmul.f32 %v3247_v28, %v863_v26 }
 0x150   : > { %v1077_v32 = vadd.f32 %v3252_v30, %v1006_v25 }
 0x151   : > { %v1076_v33 = vadd.f32 %v3252_v30, %v1005_v29  ;;  %v2553_v34 = vpop.f32.mrb[48].mxu0  ;;  %2673 = vmatprep.mubr.f32.mxu1 %v1138_v27 }
 0x152   : > { %v1008_v35 = vmul.f32 %v2553_v34, %v3247_v28  ;;  %v873_v36 = vpop.f32.mrb[49].mxu0  ;;  %2674 = vmatmul.mubr.f32.gmra.mrb[44].mxu1 %v1139_v31  ;;  %v1141_v39 = vmax.f32 %v1077_v32, 0.0 }
 0x153   : > { %v1140_v37 = vmax.f32 %v1076_v33, 0.0  ;;  %v1007_v38 = vmul.f32 %v3247_v28, %v873_v36 }
 0x154   : > { %v1079_v40 = vadd.f32 %v3252_v30, %v1008_v35 }
 0x155   : > { %v1078_v41 = vadd.f32 %v3252_v30, %v1007_v38  ;;  %2676 = vmatprep.mubr.f32.mxu1 %v1140_v37  ;;  %v2556_v42 = vpop.f32.mrb[50].mxu0  ;;  %v3385_v38 = vld [vmem:[%s3634_s5] ss:$0 sm:$0xff] }
 0x156   : > { %2677 = vmatmul.mubr.f32.gmra.mrb[46].mxu1 %v1141_v39  ;;  %v1010_v43 = vmul.f32 %v2556_v42, %v3247_v28  ;;  %v883_v44 = vpop.f32.mrb[51].mxu0  ;;  %v1143_v47 = vmax.f32 %v1079_v40, 0.0 }
 0x157   : > { %v1142_v45 = vmax.f32 %v1078_v41, 0.0  ;;  %v1009_v46 = vmul.f32 %v3247_v28, %v883_v44 }
 0x158   : > { %v1081_v48 = vadd.f32 %v3252_v30, %v1010_v43 }
 0x159   : > { %2679 = vmatprep.mubr.f32.mxu1 %v1142_v45  ;;  %v1080_v49 = vadd.f32 %v3252_v30, %v1009_v46  ;;  %v2559_v50 = vpop.f32.mrb[52].mxu0 }
 0x15a   : > { %v1145_v51 = vmax.f32 %v1081_v48, 0.0  ;;  %2680 = vmatmul.mubr.f32.gmra.mrb[48].mxu1 %v1143_v47  ;;  %v1012_v52 = vmul.f32 %v2559_v50, %v3247_v28  ;;  %v893_v53 = vpop.f32.mrb[53].mxu0 }
 0x15b   : > { %v1144_v54 = vmax.f32 %v1080_v49, 0.0  ;;  %v1011_v55 = vmul.f32 %v3247_v28, %v893_v53 }
 0x15c   : > { %v1083_v56 = vadd.f32 %v3252_v30, %v1012_v52 }
 0x15d   : > { %2682 = vmatprep.mubr.f32.mxu1 %v1144_v54  ;;  %v1082_v57 = vadd.f32 %v3252_v30, %v1011_v55  ;;  %v2562_v58 = vpop.f32.mrb[54].mxu0 }
 0x15e   : > { %v1147_v59 = vmax.f32 %v1083_v56, 0.0  ;;  %2683 = vmatmul.mubr.f32.gmra.mrb[50].mxu1 %v1145_v51  ;;  %v1014_v60 = vmul.f32 %v2562_v58, %v3247_v28  ;;  %v903_v61 = vpop.f32.mrb[55].mxu0 }
 0x15f   : > { %v1146_v62 = vmax.f32 %v1082_v57, 0.0  ;;  %v1013_v63 = vmul.f32 %v3247_v28, %v903_v61 }
 0x160   : > { %v1085_v0 = vadd.f32 %v3252_v30, %v1014_v60 }
 0x161   : > { %2685 = vmatprep.mubr.f32.mxu1 %v1146_v62  ;;  %v1084_v1 = vadd.f32 %v3252_v30, %v1013_v63  ;;  %v2565_v2 = vpop.f32.mrb[56].mxu0 }
 0x162   : > { %v1149_v3 = vmax.f32 %v1085_v0, 0.0  ;;  %2686 = vmatmul.mubr.f32.gmra.mrb[52].mxu1 %v1147_v59  ;;  %v1016_v4 = vmul.f32 %v2565_v2, %v3247_v28  ;;  %v913_v5 = vpop.f32.mrb[57].mxu0 }
 0x163   : > { %v1148_v6 = vmax.f32 %v1084_v1, 0.0  ;;  %v1015_v7 = vmul.f32 %v3247_v28, %v913_v5 }
 0x164   : > { %v1087_v8 = vadd.f32 %v3252_v30, %v1016_v4 }
 0x165   : > { %2688 = vmatprep.mubr.f32.mxu1 %v1148_v6  ;;  %v1086_v9 = vadd.f32 %v3252_v30, %v1015_v7  ;;  %v2568_v10 = vpop.f32.mrb[58].mxu0 }
 0x166   : > { %v1151_v11 = vmax.f32 %v1087_v8, 0.0  ;;  %2689 = vmatmul.mubr.f32.gmra.mrb[54].mxu1 %v1149_v3  ;;  %v1018_v12 = vmul.f32 %v2568_v10, %v3247_v28  ;;  %v923_v13 = vpop.f32.mrb[59].mxu0 }
 0x167   : > { %v1150_v14 = vmax.f32 %v1086_v9, 0.0  ;;  %v1017_v15 = vmul.f32 %v3247_v28, %v923_v13 }
 0x168   : > { %v1089_v16 = vadd.f32 %v3252_v30, %v1018_v12 }
 0x169   : > { %2691 = vmatprep.mubr.f32.mxu1 %v1150_v14  ;;  %v1088_v17 = vadd.f32 %v3252_v30, %v1017_v15  ;;  %v2571_v18 = vpop.f32.mrb[60].mxu0 }
 0x16a   : > { %v1153_v19 = vmax.f32 %v1089_v16, 0.0  ;;  %2692 = vmatmul.mubr.f32.gmra.mrb[56].mxu1 %v1151_v11  ;;  %v1020_v20 = vmul.f32 %v2571_v18, %v3247_v28  ;;  %v933_v21 = vpop.f32.mrb[61].mxu0 }
 0x16b   : > { %v1152_v22 = vmax.f32 %v1088_v17, 0.0  ;;  %v1019_v23 = vmul.f32 %v3247_v28, %v933_v21 }
 0x16c   : > { %v1091_v24 = vadd.f32 %v3252_v30, %v1020_v20 }
 0x16d   : > { %2694 = vmatprep.mubr.f32.mxu1 %v1152_v22  ;;  %v1090_v25 = vadd.f32 %v3252_v30, %v1019_v23  ;;  %v2574_v26 = vpop.f32.mrb[62].mxu0 }
 0x16e   : > { %v1155_v27 = vmax.f32 %v1091_v24, 0.0  ;;  %2695 = vmatmul.mubr.f32.gmra.mrb[58].mxu1 %v1153_v19  ;;  %v1022_v29 = vmul.f32 %v2574_v26, %v3247_v28  ;;  %v943_v31 = vpop.f32.mrb[63].mxu0 }
 0x16f   : > { %v1154_v32 = vmax.f32 %v1090_v25, 0.0  ;;  %v1021_v33 = vmul.f32 %v3247_v28, %v943_v31 }
 0x170   : > { %v1093_v34 = vadd.f32 %v3252_v30, %v1022_v29 }
 0x171   : > { %2697 = vmatprep.mubr.f32.mxu1 %v1154_v32  ;;  %v1092_v35 = vadd.f32 %v3252_v30, %v1021_v33  ;;  %v3421_v33 = vld [vmem:[%s3635_s6] sm:$0x1] }
 0x172   : > { %v1157_v36 = vmax.f32 %v1093_v34, 0.0  ;;  %2698 = vmatmul.mubr.f32.gmra.mrb[60].mxu1 %v1155_v27  ;;  %2439 = vmatprep.mubr.msk.f32.mxu0 %vm1641_vm1, %v3421_v33 }
 0x173   : > { %v1156_v37 = vmax.f32 %v1092_v35, 0.0 }
 0x175   : > { %2700 = vmatprep.mubr.f32.mxu1 %v1156_v37 }
 0x176   : > { %2701 = vmatmul.mubr.f32.gmra.mrb[62].mxu1 %v1157_v36 }
 0x177   : > { %2473 = vmatprep.mubr.msk.f32.mxu1 %vm1641_vm1, %v3421_v33 }
 0x1cd   : > { %v2609_v39 = vpop.f32.mrb[0].mxu1 }
 0x1ce   : > { %v1253_v40 = vadd.f32 %v2609_v39, %v3385_v38  ;;  %v1247_v41 = vpop.f32.mrb[1].mxu1 }
 0x1cf   : > { %v1248_v28 = vadd.f32 %v3385_v38, %v1247_v41 }
 0x1d0   : > { %v1567_v42 = vmax.f32 %v1253_v40, 0.0 }
 0x1d1   : > { %v1566_v43 = vmax.f32 %v1248_v28, 0.0  ;;  %v2612_v44 = vpop.f32.mrb[2].mxu1 }
 0x1d2   : > { %v1263_v30 = vadd.f32 %v2612_v44, %v3385_v38  ;;  %v1257_v45 = vpop.f32.mrb[3].mxu1 }
 0x1d3   : > { %v3390_v46 = vpack.c.bf16 %v1567_v42, %v1566_v43  ;;  %v1258_v47 = vadd.f32 %v3385_v38, %v1257_v45 }
 0x1d4   : > { %v1569_v48 = vmax.f32 %v1263_v30, 0.0 }
 0x1d5   : > { %v1568_v49 = vmax.f32 %v1258_v47, 0.0  ;;  %v2615_v50 = vpop.f32.mrb[4].mxu1  ;;  %v1631_v47 = vld [vmem:[#allocation2] sm:$0x1] }
 0x1d6   : > { %v1273_v51 = vadd.f32 %v2615_v50, %v3385_v38  ;;  %v1267_v52 = vpop.f32.mrb[5].mxu1  ;;  %v2957_v50 = vmov 0  }
 0x1d7   : > { %v3394_v53 = vpack.c.bf16 %v1569_v48, %v1568_v49  ;;  %v1268_v54 = vadd.f32 %v3385_v38, %v1267_v52  ;;  %2876 = vset.pattern.permute.xlu0 %v2957_v50 }
 0x1d8   : > { %v1571_v55 = vmax.f32 %v1273_v51, 0.0  ;;  %1634 = vperm.xlu0 %2876, %v1631_v47  }
 0x1d9   : > { %v1570_v56 = vmax.f32 %v1268_v54, 0.0  ;;  %v2618_v57 = vpop.f32.mrb[6].mxu1 }
 0x1da   : > { %v1283_v58 = vadd.f32 %v2618_v57, %v3385_v38  ;;  %v1277_v59 = vpop.f32.mrb[7].mxu1 }
 0x1db   : > { %v3398_v60 = vpack.c.bf16 %v1571_v55, %v1570_v56  ;;  %v1278_v61 = vadd.f32 %v3385_v38, %v1277_v59 }
 0x1dc   : > { %v1573_v62 = vmax.f32 %v1283_v58, 0.0 }
 0x1dd   : > { %v1572_v63 = vmax.f32 %v1278_v61, 0.0  ;;  %v2621_v0 = vpop.f32.mrb[8].mxu1 }
 0x1de   : > { %v1293_v1 = vadd.f32 %v2621_v0, %v3385_v38  ;;  %v1287_v2 = vpop.f32.mrb[9].mxu1 }
 0x1df   : > { %v3402_v3 = vpack.c.bf16 %v1573_v62, %v1572_v63  ;;  %v1288_v4 = vadd.f32 %v3385_v38, %v1287_v2 }
 0x1e0   : > { %v1575_v5 = vmax.f32 %v1293_v1, 0.0 }
 0x1e1   : > { %v1574_v6 = vmax.f32 %v1288_v4, 0.0  ;;  %v2624_v7 = vpop.f32.mrb[10].mxu1 }
 0x1e2   : > { %v1303_v8 = vadd.f32 %v2624_v7, %v3385_v38  ;;  %v1297_v9 = vpop.f32.mrb[11].mxu1 }
 0x1e3   : > { %v3406_v10 = vpack.c.bf16 %v1575_v5, %v1574_v6  ;;  %v1298_v11 = vadd.f32 %v3385_v38, %v1297_v9 }
 0x1e4   : > { %v1577_v12 = vmax.f32 %v1303_v8, 0.0 }
 0x1e5   : > { %v1576_v13 = vmax.f32 %v1298_v11, 0.0  ;;  %v2627_v14 = vpop.f32.mrb[12].mxu1 }
 0x1e6   : > { %v1313_v15 = vadd.f32 %v2627_v14, %v3385_v38  ;;  %v1307_v16 = vpop.f32.mrb[13].mxu1 }
 0x1e7   : > { %v3410_v17 = vpack.c.bf16 %v1577_v12, %v1576_v13  ;;  %v1308_v18 = vadd.f32 %v3385_v38, %v1307_v16 }
 0x1e8   : > { %v1579_v19 = vmax.f32 %v1313_v15, 0.0 }
 0x1e9   : > { %v1578_v20 = vmax.f32 %v1308_v18, 0.0  ;;  %v2630_v21 = vpop.f32.mrb[14].mxu1 }
 0x1ea   : > { %v1323_v22 = vadd.f32 %v2630_v21, %v3385_v38  ;;  %v1317_v23 = vpop.f32.mrb[15].mxu1 }
 0x1eb   : > { %v3414_v24 = vpack.c.bf16 %v1579_v19, %v1578_v20  ;;  %v1318_v25 = vadd.f32 %v3385_v38, %v1317_v23 }
 0x1ec   : > { %v1581_v26 = vmax.f32 %v1323_v22, 0.0 }
 0x1ed   : > { %v1580_v27 = vmax.f32 %v1318_v25, 0.0  ;;  %v2633_v29 = vpop.f32.mrb[16].mxu1 }
 0x1ee   : > { %v1333_v31 = vadd.f32 %v2633_v29, %v3385_v38  ;;  %v1327_v32 = vpop.f32.mrb[17].mxu1 }
 0x1ef   : > { %v3423_v34 = vpack.c.bf16 %v1581_v26, %v1580_v27  ;;  %v1328_v35 = vadd.f32 %v3385_v38, %v1327_v32 }
 0x1f0   : > { %v1583_v36 = vmax.f32 %v1333_v31, 0.0 }
 0x1f1   : > { %v1582_v37 = vmax.f32 %v1328_v35, 0.0  ;;  %v2636_v39 = vpop.f32.mrb[18].mxu1 }
 0x1f2   : > { %v1343_v40 = vadd.f32 %v2636_v39, %v3385_v38  ;;  %v1337_v41 = vpop.f32.mrb[19].mxu1 }
 0x1f3   : > { %v2739_v42 = vpack.c.bf16 %v1583_v36, %v1582_v37  ;;  %v1338_v43 = vadd.f32 %v3385_v38, %v1337_v41 }
 0x1f4   : > { %v1585_v44 = vmax.f32 %v1343_v40, 0.0 }
 0x1f5   : > { %v1584_v30 = vmax.f32 %v1338_v43, 0.0  ;;  %v2639_v45 = vpop.f32.mrb[20].mxu1  ;;  %2741 = vmatprep.subr.msk.bf16.mxu0 %vm3433_vm2, %v2739_v42 }
 0x1f6   : > { %v1353_v48 = vadd.f32 %v2639_v45, %v3385_v38  ;;  %v1347_v49 = vpop.f32.mrb[21].mxu1  ;;  %2744 = vmatpush3.bf16.xpose.msk.msra.mxu0 %vm3433_vm2, %v3390_v46 }
 0x1f7   : > { %v2745_v51 = vpack.c.bf16 %v1585_v44, %v1584_v30  ;;  %v1348_v52 = vadd.f32 %v3385_v38, %v1347_v49 }
 0x1f8   : > { %v1587_v54 = vmax.f32 %v1353_v48, 0.0 }
 0x1f9   : > { %v1586_v55 = vmax.f32 %v1348_v52, 0.0  ;;  %v2642_v56 = vpop.f32.mrb[22].mxu1  ;;  %2747 = vmatprep.subr.msk.bf16.mxu0 %vm3433_vm2, %v2745_v51 }
 0x1fa   : > { %v1363_v57 = vadd.f32 %v2642_v56, %v3385_v38  ;;  %v1357_v58 = vpop.f32.mrb[23].mxu1 }
 0x1fb   : > { %v2751_v59 = vpack.c.bf16 %v1587_v54, %v1586_v55  ;;  %v1358_v61 = vadd.f32 %v3385_v38, %v1357_v58 }
 0x1fc   : > { %v1589_v62 = vmax.f32 %v1363_v57, 0.0 }
 0x1fd   : > { %v1588_v46 = vmax.f32 %v1358_v61, 0.0  ;;  %v2645_v63 = vpop.f32.mrb[24].mxu1 }
 0x1fe   : > { %v1373_v0 = vadd.f32 %v2645_v63, %v3385_v38  ;;  %v1367_v1 = vpop.f32.mrb[25].mxu1  ;;  %2750 = vmatpush3.bf16.xpose.msk.msra.mxu0 %vm3433_vm2, %v3394_v53 }
 0x1ff   : > { %v2757_v2 = vpack.c.bf16 %v1589_v62, %v1588_v46  ;;  %v1368_v4 = vadd.f32 %v3385_v38, %v1367_v1  ;;  %2753 = vmatprep.subr.msk.bf16.mxu0 %vm3433_vm2, %v2751_v59 }
 0x200   : > { %v1591_v5 = vmax.f32 %v1373_v0, 0.0 }
 0x201   : > { %v1590_v6 = vmax.f32 %v1368_v4, 0.0  ;;  %v2648_v7 = vpop.f32.mrb[26].mxu1 }
 0x202   : > { %v1383_v8 = vadd.f32 %v2648_v7, %v3385_v38  ;;  %v1377_v9 = vpop.f32.mrb[27].mxu1 }
 0x203   : > { %v2763_v11 = vpack.c.bf16 %v1591_v5, %v1590_v6  ;;  %v1378_v12 = vadd.f32 %v3385_v38, %v1377_v9 }
 0x204   : > { %v1593_v13 = vmax.f32 %v1383_v8, 0.0 }
 0x205   : > { %v1592_v14 = vmax.f32 %v1378_v12, 0.0  ;;  %v2651_v15 = vpop.f32.mrb[28].mxu1 }
 0x206   : > { %v1393_v53 = vadd.f32 %v2651_v15, %v3385_v38  ;;  %v1387_v16 = vpop.f32.mrb[29].mxu1  ;;  %2756 = vmatpush3.bf16.xpose.msk.msra.mxu0 %vm3433_vm2, %v3398_v60 }
 0x207   : > { %v2769_v18 = vpack.c.bf16 %v1593_v13, %v1592_v14  ;;  %v1388_v19 = vadd.f32 %v3385_v38, %v1387_v16  ;;  %2759 = vmatprep.subr.msk.bf16.mxu0 %vm3433_vm2, %v2757_v2 }
 0x208   : > { %v1595_v20 = vmax.f32 %v1393_v53, 0.0 }
 0x209   : > { %v1594_v21 = vmax.f32 %v1388_v19, 0.0  ;;  %v2654_v22 = vpop.f32.mrb[30].mxu1 }
 0x20a   : > { %v1403_v23 = vadd.f32 %v2654_v22, %v3385_v38  ;;  %v1397_v25 = vpop.f32.mrb[31].mxu1 }
 0x20b   : > { %v2775_v26 = vpack.c.bf16 %v1595_v20, %v1594_v21  ;;  %v1398_v27 = vadd.f32 %v3385_v38, %v1397_v25 }
 0x20c   : > { %v1597_v29 = vmax.f32 %v1403_v23, 0.0 }
 0x20d   : > { %v1596_v31 = vmax.f32 %v1398_v27, 0.0  ;;  %v2657_v32 = vpop.f32.mrb[32].mxu1 }
 0x20e   : > { %v1413_v60 = vadd.f32 %v2657_v32, %v3385_v38  ;;  %v1407_v35 = vpop.f32.mrb[33].mxu1  ;;  %2762 = vmatpush3.bf16.xpose.msk.msra.mxu0 %vm3433_vm2, %v3402_v3 }
 0x20f   : > { %v2781_v36 = vpack.c.bf16 %v1597_v29, %v1596_v31  ;;  %v1408_v37 = vadd.f32 %v3385_v38, %v1407_v35  ;;  %2765 = vmatprep.subr.msk.bf16.mxu0 %vm3433_vm2, %v2763_v11 }
 0x210   : > { %v1599_v39 = vmax.f32 %v1413_v60, 0.0 }
 0x211   : > { %v1598_v40 = vmax.f32 %v1408_v37, 0.0  ;;  %v2660_v41 = vpop.f32.mrb[34].mxu1 }
 0x212   : > { %v1423_v42 = vadd.f32 %v2660_v41, %v3385_v38  ;;  %v1417_v43 = vpop.f32.mrb[35].mxu1 }
 0x213   : > { %v3475_v44 = vpack.c.bf16 %v1599_v39, %v1598_v40  ;;  %v1418_v30 = vadd.f32 %v3385_v38, %v1417_v43 }
 0x214   : > { %v1601_v45 = vmax.f32 %v1423_v42, 0.0 }
 0x215   : > { %v1600_v47 = vmax.f32 %v1418_v30, 0.0  ;;  %v2663_v48 = vpop.f32.mrb[36].mxu1 }
 0x216   : > { %v1433_v3 = vadd.f32 %v2663_v48, %v3385_v38  ;;  %v1427_v49 = vpop.f32.mrb[37].mxu1  ;;  %2768 = vmatpush3.bf16.xpose.msk.msra.mxu0 %vm3433_vm2, %v3406_v10 }
 0x217   : > { %v3482_v50 = vpack.c.bf16 %v1601_v45, %v1600_v47  ;;  %v1428_v51 = vadd.f32 %v3385_v38, %v1427_v49  ;;  %2771 = vmatprep.subr.msk.bf16.mxu0 %vm3433_vm2, %v2769_v18 }
 0x218   : > { %v1603_v52 = vmax.f32 %v1433_v3, 0.0 }
 0x219   : > { %v1602_v54 = vmax.f32 %v1428_v51, 0.0  ;;  %v2666_v55 = vpop.f32.mrb[38].mxu1 }
 0x21a   : > { %v1443_v56 = vadd.f32 %v2666_v55, %v3385_v38  ;;  %v1437_v57 = vpop.f32.mrb[39].mxu1 }
 0x21b   : > { %v3488_v58 = vpack.c.bf16 %v1603_v52, %v1602_v54  ;;  %v1438_v59 = vadd.f32 %v3385_v38, %v1437_v57 }
 0x21c   : > { %v1605_v61 = vmax.f32 %v1443_v56, 0.0 }
 0x21d   : > { %v1604_v62 = vmax.f32 %v1438_v59, 0.0  ;;  %v2669_v10 = vpop.f32.mrb[40].mxu1 }
 0x21e   : > { %v1453_v46 = vadd.f32 %v2669_v10, %v3385_v38  ;;  %v1447_v63 = vpop.f32.mrb[41].mxu1  ;;  %2774 = vmatpush3.bf16.xpose.msk.msra.mxu0 %vm3433_vm2, %v3410_v17 }
 0x21f   : > { %v3495_v0 = vpack.c.bf16 %v1605_v61, %v1604_v62  ;;  %v1448_v1 = vadd.f32 %v3385_v38, %v1447_v63  ;;  %2777 = vmatprep.subr.msk.bf16.mxu0 %vm3433_vm2, %v2775_v26 }
 0x220   : > { %v1607_v2 = vmax.f32 %v1453_v46, 0.0 }
 0x221   : > { %v1606_v4 = vmax.f32 %v1448_v1, 0.0  ;;  %v2672_v5 = vpop.f32.mrb[42].mxu1 }
 0x222   : > { %v1463_v6 = vadd.f32 %v2672_v5, %v3385_v38  ;;  %v1457_v7 = vpop.f32.mrb[43].mxu1 }
 0x223   : > { %v3501_v8 = vpack.c.bf16 %v1607_v2, %v1606_v4  ;;  %v1458_v9 = vadd.f32 %v3385_v38, %v1457_v7 }
 0x224   : > { %v1609_v11 = vmax.f32 %v1463_v6, 0.0 }
 0x225   : > { %v1608_v12 = vmax.f32 %v1458_v9, 0.0  ;;  %v2675_v17 = vpop.f32.mrb[44].mxu1 }
 0x226   : > { %v1473_v13 = vadd.f32 %v2675_v17, %v3385_v38  ;;  %v1467_v14 = vpop.f32.mrb[45].mxu1  ;;  %2780 = vmatpush3.bf16.xpose.msk.msra.mxu0 %vm3433_vm2, %v3414_v24 }
 0x227   : > { %v3508_v15 = vpack.c.bf16 %v1609_v11, %v1608_v12  ;;  %v1468_v53 = vadd.f32 %v3385_v38, %v1467_v14  ;;  %2783 = vmatprep.subr.msk.bf16.mxu0 %vm3433_vm2, %v2781_v36 }
 0x228   : > { %v1611_v16 = vmax.f32 %v1473_v13, 0.0 }
 0x229   : > { %v1610_v18 = vmax.f32 %v1468_v53, 0.0  ;;  %v2678_v19 = vpop.f32.mrb[46].mxu1 }
 0x22a   : > { %v1483_v20 = vadd.f32 %v2678_v19, %v3385_v38  ;;  %v1477_v21 = vpop.f32.mrb[47].mxu1 }
 0x22b   : > { %v3514_v22 = vpack.c.bf16 %v1611_v16, %v1610_v18  ;;  %v1478_v23 = vadd.f32 %v3385_v38, %v1477_v21 }
 0x22c   : > { %v1613_v25 = vmax.f32 %v1483_v20, 0.0 }
 0x22d   : > { %v1612_v26 = vmax.f32 %v1478_v23, 0.0  ;;  %v2681_v24 = vpop.f32.mrb[48].mxu1 }
 0x22e   : > { %v1493_v27 = vadd.f32 %v2681_v24, %v3385_v38  ;;  %v1487_v29 = vpop.f32.mrb[49].mxu1  ;;  %2786 = vmatpush3.bf16.xpose.msk.msra.mxu0 %vm3433_vm2, %v3423_v34 }
 0x22f   : > { %v3521_v31 = vpack.c.bf16 %v1613_v25, %v1612_v26  ;;  %v1488_v32 = vadd.f32 %v3385_v38, %v1487_v29 }
 0x230   : > { %v1615_v60 = vmax.f32 %v1493_v27, 0.0 }
 0x231   : > { %v1614_v35 = vmax.f32 %v1488_v32, 0.0  ;;  %v2684_v36 = vpop.f32.mrb[50].mxu1 }
 0x232   : > { %v1503_v37 = vadd.f32 %v2684_v36, %v3385_v38  ;;  %v1497_v39 = vpop.f32.mrb[51].mxu1 }
 0x233   : > { %v2787_v40 = vpack.c.bf16 %v1615_v60, %v1614_v35  ;;  %v1498_v41 = vadd.f32 %v3385_v38, %v1497_v39 }
 0x234   : > { %v1617_v42 = vmax.f32 %v1503_v37, 0.0 }
 0x235   : > { %2789 = vmatprep.subr.msk.bf16.mxu1 %vm3433_vm2, %v2787_v40  ;;  %v1616_v43 = vmax.f32 %v1498_v41, 0.0  ;;  %v2687_v30 = vpop.f32.mrb[52].mxu1  ;;  %2440 = vmatmul.mubr.msk.f32.vlgmr.msra.gmra.mrb[64].mxu0 %vm1641_vm1, %v3421_v33 }
 0x236   : > { %2792 = vmatpush3.bf16.xpose.msk.msra.mxu1 %vm3433_vm2, %v3475_v44  ;;  %v1513_v34 = vadd.f32 %v2687_v30, %v3385_v38  ;;  %v1507_v45 = vpop.f32.mrb[53].mxu1 }
 0x237   : > { %v2793_v47 = vpack.c.bf16 %v1617_v42, %v1616_v43  ;;  %v1508_v48 = vadd.f32 %v3385_v38, %v1507_v45 }
 0x238   : > { %v1619_v3 = vmax.f32 %v1513_v34, 0.0 }
 0x239   : > { %2795 = vmatprep.subr.msk.bf16.mxu1 %vm3433_vm2, %v2793_v47  ;;  %v1618_v49 = vmax.f32 %v1508_v48, 0.0  ;;  %v2690_v51 = vpop.f32.mrb[54].mxu1 }
 0x23a   : > { %v1523_v52 = vadd.f32 %v2690_v51, %v3385_v38  ;;  %v1517_v54 = vpop.f32.mrb[55].mxu1  ;;  %v2958_v51 = vmov 1966171168  }
 0x23b   : > { %v2799_v55 = vpack.c.bf16 %v1619_v3, %v1618_v49  ;;  %v1518_v56 = vadd.f32 %v3385_v38, %v1517_v54 }
 0x23c   : > { %v1621_v57 = vmax.f32 %v1523_v52, 0.0  ;;  %v2010_v52 = vunpack.c.l.s4 %v2958_v51 }
 0x23d   : > { %v1620_v44 = vmax.f32 %v1518_v56, 0.0  ;;  %v2693_v59 = vpop.f32.mrb[56].mxu1 }
 0x23e   : > { %2798 = vmatpush3.bf16.xpose.msk.msra.mxu1 %vm3433_vm2, %v3482_v50  ;;  %v1533_v61 = vadd.f32 %v2693_v59, %v3385_v38  ;;  %v1527_v62 = vpop.f32.mrb[57].mxu1  ;;  %v2011_v54 = vunpack.c.0.s8 %v2010_v52 }
 0x23f   : > { %2801 = vmatprep.subr.msk.bf16.mxu1 %vm3433_vm2, %v2799_v55  ;;  %v2805_v10 = vpack.c.bf16 %v1621_v57, %v1620_v44  ;;  %v1528_v46 = vadd.f32 %v3385_v38, %v1527_v62 }
 0x240   : > { %v1623_v63 = vmax.f32 %v1533_v61, 0.0 }
 0x241   : > { %v1622_v1 = vmax.f32 %v1528_v46, 0.0  ;;  %v2696_v2 = vpop.f32.mrb[58].mxu1 }
 0x242   : > { %v1543_v4 = vadd.f32 %v2696_v2, %v3385_v38  ;;  %v1537_v5 = vpop.f32.mrb[59].mxu1 }
 0x243   : > { %v2811_v6 = vpack.c.bf16 %v1623_v63, %v1622_v1  ;;  %v1538_v7 = vadd.f32 %v3385_v38, %v1537_v5 }
 0x244   : > { %v1625_v9 = vmax.f32 %v1543_v4, 0.0 }
 0x245   : > { %v1624_v50 = vmax.f32 %v1538_v7, 0.0  ;;  %v2699_v11 = vpop.f32.mrb[60].mxu1 }
 0x246   : > { %2804 = vmatpush3.bf16.xpose.msk.msra.mxu1 %vm3433_vm2, %v3488_v58  ;;  %v1553_v12 = vadd.f32 %v2699_v11, %v3385_v38  ;;  %v1547_v17 = vpop.f32.mrb[61].mxu1 }
 0x247   : > { %2807 = vmatprep.subr.msk.bf16.mxu1 %vm3433_vm2, %v2805_v10  ;;  %v2817_v13 = vpack.c.bf16 %v1625_v9, %v1624_v50  ;;  %v1548_v14 = vadd.f32 %v3385_v38, %v1547_v17 }
 0x248   : > { %v1627_v53 = vmax.f32 %v1553_v12, 0.0 }
 0x249   : > { %v1626_v16 = vmax.f32 %v1548_v14, 0.0  ;;  %v2702_v18 = vpop.f32.mrb[62].mxu1 }
 0x24a   : > { %v1563_v19 = vadd.f32 %v2702_v18, %v3385_v38  ;;  %v1557_v20 = vpop.f32.mrb[63].mxu1 }
 0x24b   : > { %v2823_v21 = vpack.c.bf16 %v1627_v53, %v1626_v16  ;;  %v1558_v23 = vadd.f32 %v3385_v38, %v1557_v20  ;;  %v1637_v38 = vlaneseq }
 0x24c   : > { %v1629_v25 = vmax.f32 %v1563_v19, 0.0 }
 0x24d   : > { %v1628_v58 = vmax.f32 %v1558_v23, 0.0  ;;  %vm2034_vm3 = vcmp.lt.s32.totalorder %v1637_v38, 512 }
 0x24e   : > { %2810 = vmatpush3.bf16.xpose.msk.msra.mxu1 %vm3433_vm2, %v3495_v0  ;;  %v1638_v0 = vshrl.u32 %v1637_v38, 7 }
 0x24f   : > { %2813 = vmatprep.subr.msk.bf16.mxu1 %vm3433_vm2, %v2811_v6  ;;  %v2829_v26 = vpack.c.bf16 %v1629_v25, %v1628_v58 }
 0x250   : > { %v2014_v55 = vsub.s32 %v2011_v54, %v1638_v0 }
 0x256   : > { %2816 = vmatpush3.bf16.xpose.msk.msra.mxu1 %vm3433_vm2, %v3501_v8  ;;  %v1639_v8 = vsub.s32 0, %v1638_v0 }
 0x257   : > { %2819 = vmatprep.subr.msk.bf16.mxu1 %vm3433_vm2, %v2817_v13 }
 0x25e   : > { %2822 = vmatpush3.bf16.xpose.msk.msra.mxu1 %vm3433_vm2, %v3508_v15  ;;  %v1635_v15 = vpop.permute.xlu0 %1634 }
 0x25f   : > { %2825 = vmatprep.subr.msk.bf16.mxu1 %vm3433_vm2, %v2823_v21  ;;  %v1640_v24 = vrot.slane %v1635_v15, %v1639_v8 }
 0x266   : > { %2828 = vmatpush3.bf16.xpose.msk.msra.mxu1 %vm3433_vm2, %v3514_v22 }
 0x267   : > { %2831 = vmatprep.subr.msk.bf16.mxu1 %vm3433_vm2, %v2829_v26 }
 0x26e   : > { %2834 = vmatpush3.bf16.xpose.msk.msra.mxu1 %vm3433_vm2, %v3521_v31 }
 0x275   : > { %2474 = vmatmul.mubr.msk.f32.vlgmr.msra.gmra.mrb[64].mxu1 %vm1641_vm1, %v3421_v33 }
 0x308   : > { %v1903_v27 = vpop.f32.mrb[64].mxu0 }
 0x309   : > { %v1904_v29 = vadd.f32 %v1903_v27, %v1640_v24  ;;  %v1905_v32 = vpop.f32.mrb[65].mxu0 }
 0x30a   : > { %v1906_v60 = vadd.f32 %v1905_v32, %v1640_v24 }
 0x30b   : > { %v2251_v22 = vmul.f32 -1.442695, %v1904_v29 }
 0x30c   : > { %v2252_v35 = vmul.f32 -1.442695, %v1906_v60 }
 0x30d   : > { %2877 = vpow2.f32 %v2251_v22 }
 0x30e   : > { %2879 = vpow2.f32 %v2252_v35 }
 0x317   : > { %v2878_v36 = vpop.eup %2877 }
 0x318   : > { %v2880_v37 = vpop.eup %2879  ;;  %v1991_v28 = vadd.f32 1.0, %v2878_v36 }
 0x319   : > { %v1992_v31 = vadd.f32 1.0, %v2880_v37 }
 0x31a   : > { %2881 = vrcp.f32 %v1991_v28 }
 0x31b   : > { %2883 = vrcp.f32 %v1992_v31 }
 0x324   : > { %v2882_v33 = vpop.eup %2881 }
 0x325   : > { %v2884_v39 = vpop.eup %2883 }
 0x326   : > { %v2007_v40 = vcombine.low %v2882_v33, %v2884_v39 }
 0x328   : > { %v2015_v59 = vrot.slane %v2007_v40, %v2014_v55 }
 0x348   : > { %v1974_v41 = vpop.f32.mrb[64].mxu1 }
 0x349   : > { %v1975_v42 = vadd.f32 %v1974_v41, %v1640_v24  ;;  %v1976_v43 = vpop.f32.mrb[65].mxu1 }
 0x34a   : > { %v1977_v30 = vadd.f32 %v1976_v43, %v1640_v24 }
 0x34b   : > { %v2253_v34 = vmul.f32 -1.442695, %v1975_v42 }
 0x34c   : > { %v2254_v45 = vmul.f32 -1.442695, %v1977_v30 }
 0x34d   : > { %2885 = vpow2.f32 %v2253_v34 }
 0x34e   : > { %2887 = vpow2.f32 %v2254_v45 }
 0x357   : > { %v2886_v47 = vpop.eup %2885 }
 0x358   : > { %v2888_v48 = vpop.eup %2887  ;;  %v1993_v3 = vadd.f32 1.0, %v2886_v47 }
 0x359   : > { %v1994_v49 = vadd.f32 1.0, %v2888_v48 }
 0x35a   : > { %2889 = vrcp.f32 %v1993_v3 }
 0x35b   : > { %2891 = vrcp.f32 %v1994_v49 }
 0x364   : > { %v2890_v56 = vpop.eup %2889 }
 0x365   : > { %v2892_v57 = vpop.eup %2891 }
 0x366   : > { %v2008_v44 = vcombine.low %v2890_v56, %v2892_v57 }
 0x368   : > { %v2022_v61 = vrot.slane %v2008_v44, %v2014_v55 }
 0x36a   : > { %v2023_v62 = vcombine.low %v2015_v59, %v2022_v61 }
 0x36c   : > { %v2030_v10 = vrot.slane %v2023_v62, %v2014_v55 }
 0x36e   : > { %2036 = vst.msk [vmem:[%s301_s11] sm:$0xf] %vm2034_vm3, %v2030_v10 }
 0x36f   : > { %2906 = shalt.err (!%p2903_p3)
}
 0x370   : > { %s2907_s22 = scalar_lea.hbm %s3587_s19, 64  ;;  %s2911_s27 = scalar_lea.hbm %s3637_s8, 128 }
 0x371   : > { %p2908_p4 = scmp.ne.s32.totalorder %s3587_s19, %s2907_s22  ;;  %p2912_p9 = scmp.lt.u32.totalorder %s3587_s19, %s3637_s8 }
 0x372   : > { %p2913_p10 = scmp.lt.u32.totalorder %s2911_s27, %s2907_s22  ;;  %p2915_p12 = scmp.lt.u32.totalorder %s2907_s22, %s3587_s19 }
 0x373   : > { %p2909_p7 = pnand %p2908_p4, %p3043_p5 }
 0x374   : > { %p2914_p11 = por %p2913_p10, %p2912_p9 }
 0x375   : > { %p2910_p8 = pneg %p2909_p7 }
 0x376   : > { %p2916_p13 = por %p2915_p12, %p2914_p11 }
 0x378   : > { %p2917_p0 = pnand %p2916_p13, %p2910_p8 }
 0x37a   : > { %2920 = shalt.err (!%p2917_p0)
}
 0x37b   : > { %2835 = dma.vmem_to_hbm [thread:$0]  (%p3043_p5), %s3589_s7, 64, %s3587_s19, %s2038_s20  }
 0x37c PF: > { %p2841_p1 = scmp.ge.s32.totalorder %s2955_s10, 2  ;;  %s2064_s13 = sand.u32 1, %s2943_s29  }
 0x37d   : > { %s2065_s14 = scalar_lea.sflag [#allocation4], %s2064_s13 }
 0x37e   : > { %p2838_p2 = pnand %p2841_p1, %p3047_p6 }
 0x380   : > { %2938 = dma.done.wait (!%p2838_p2), %s2065_s14, 64  }
 0x381   : > { %2940 = vsyncadd (!%p2838_p2), %s2065_s14, 4294967232  ;;  %p20_p3 = scmp.ge.s32.totalorder %s3031_s12, 4   ;;  %s3642_s29 = smov %s2947_s30 }
 0x382   : > { %s3643_s30 = smov %s2951_s9  ;;  %s3644_s9 = smov %s3041_s15 }
 0x383   : > { %s3645_s10 = smov %s3031_s12  ;;  %22 = sbr.rel (!%p20_p3) target bundleno = 6 (0x6), region = 87 }
 0x38a   :  { %2070 = vsyncpa [#allocation4], 1 }
 0x38b   :  { %2072 = vsyncpa [#allocation4 + $0x1], 1 }

</bundles_post_ra>
